<compile_context>
chip_gen: v6e
topology: v6e:2x2x1
jax: 0.10.0
libtpu: 0.0.40
codegen_flags: <defaults>
</compile_context>

<pallas_src>
import functools
import math

import jax
import jax.numpy as jnp
from jax.experimental import pallas as pl
from jax.experimental.pallas import tpu as pltpu


# ------------------------------ helpers ------------------------------------

def _gelu(x, approx=False):
    if approx:
        # tanh approximation -> EUP slot, essentially free under the matmuls.
        c = 0.7978845608028654  # sqrt(2/pi)
        return 0.5 * x * (1.0 + jnp.tanh(c * (x + 0.044715 * x * x * x)))
    # torch.nn.functional.gelu default ('none'): 0.5*x*(1+erf(x/sqrt(2)))
    return 0.5 * x * (1.0 + jax.lax.erf(x * 0.7071067811865475))


def _round_up(n, m):
    return ((n + m - 1) // m) * m


def _choose_m_tile(M, target):
    """Token-tile size (multiple of 8), preferring divisors of M and >= 2 tiles."""
    Mp8 = _round_up(max(M, 8), 8)
    best = None
    t = (min(target, Mp8) // 8) * 8
    while t >= 8:
        if Mp8 % t == 0:
            best = t
            break
        t -= 8
    if best is None:
        best = min(_round_up(target, 8), Mp8)
    # Keep at least 2 M tiles so v7x megacore ("parallel" axis) has work per core.
    if Mp8 // best < 2 and Mp8 >= 16:
        best = _round_up((Mp8 + 1) // 2, 8)
    Mp = _round_up(M, best)
    return best, Mp


def _pick_inner_tile(inner, target):
    """Largest aligned divisor of `inner` <= target (256-aligned when possible)."""
    if inner <= target:
        return inner
    align = 256 if inner % 256 == 0 else 128
    t = (min(target, inner) // align) * align
    while t >= align:
        if inner % t == 0:
            return t
        t -= align
    return inner  # no aligned divisor -> single full-extent reduction step


# -------------------- resident-weights kernels (grid = (M_tiles,)) ----------

def _ff_geglu_resident_kernel(x_ref, w1x_ref, b1x_ref, w1g_ref, b1g_ref,
                              w2_ref, b2_ref, o_ref, *, approx_gelu):
    x = x_ref[...]
    hx = jnp.dot(x, w1x_ref[...], preferred_element_type=jnp.float32)
    hx = hx + b1x_ref[...].astype(jnp.float32)
    hg = jnp.dot(x, w1g_ref[...], preferred_element_type=jnp.float32)
    hg = hg + b1g_ref[...].astype(jnp.float32)
    g = (hx * _gelu(hg, approx_gelu)).astype(w2_ref.dtype)   # 16-bit MXU operands when w2 is bf16
    y = jnp.dot(g, w2_ref[...], preferred_element_type=jnp.float32)
    o_ref[...] = (y + b2_ref[...].astype(jnp.float32)).astype(o_ref.dtype)


def _ff_gelu_resident_kernel(x_ref, w1_ref, b1_ref, w2_ref, b2_ref, o_ref,
                             *, approx_gelu):
    x = x_ref[...]
    h = jnp.dot(x, w1_ref[...], preferred_element_type=jnp.float32)
    h = h + b1_ref[...].astype(jnp.float32)
    g = _gelu(h, approx_gelu).astype(w2_ref.dtype)
    y = jnp.dot(g, w2_ref[...], preferred_element_type=jnp.float32)
    o_ref[...] = (y + b2_ref[...].astype(jnp.float32)).astype(o_ref.dtype)


# ------------- tiled-reduction kernels (grid = (M_tiles, inner_tiles)) ------
# Per (i, j):  h_j = x_i @ w1[:, j] (+b1),  g_j = act(h_j),
#              acc_i += g_j @ w2[j, :];  finalize: out_i = acc_i + b2.

def _ff_geglu_tiled_kernel(x_ref, w1x_ref, b1x_ref, w1g_ref, b1g_ref,
                           w2_ref, b2_ref, o_ref, acc_ref, *, approx_gelu):
    j = pl.program_id(1)

    @pl.when(j == 0)
    def _():
        acc_ref[...] = jnp.zeros_like(acc_ref)

    x = x_ref[...]
    hx = jnp.dot(x, w1x_ref[...], preferred_element_type=jnp.float32)
    hx = hx + b1x_ref[...].astype(jnp.float32)
    hg = jnp.dot(x, w1g_ref[...], preferred_element_type=jnp.float32)
    hg = hg + b1g_ref[...].astype(jnp.float32)
    g = (hx * _gelu(hg, approx_gelu)).astype(w2_ref.dtype)
    acc_ref[...] += jnp.dot(g, w2_ref[...], preferred_element_type=jnp.float32)

    @pl.when(j == pl.num_programs(1) - 1)
    def _():
        o_ref[...] = (acc_ref[...] + b2_ref[...].astype(jnp.float32)).astype(o_ref.dtype)


def _ff_gelu_tiled_kernel(x_ref, w1_ref, b1_ref, w2_ref, b2_ref, o_ref,
                          acc_ref, *, approx_gelu):
    j = pl.program_id(1)

    @pl.when(j == 0)
    def _():
        acc_ref[...] = jnp.zeros_like(acc_ref)

    x = x_ref[...]
    h = jnp.dot(x, w1_ref[...], preferred_element_type=jnp.float32)
    h = h + b1_ref[...].astype(jnp.float32)
    g = _gelu(h, approx_gelu).astype(w2_ref.dtype)
    acc_ref[...] += jnp.dot(g, w2_ref[...], preferred_element_type=jnp.float32)

    @pl.when(j == pl.num_programs(1) - 1)
    def _():
        o_ref[...] = (acc_ref[...] + b2_ref[...].astype(jnp.float32)).astype(o_ref.dtype)


# ------------------------------ wrapper --------------------------------------

def feed_forward(x, params, *, glu=True, tm=512, tn_inner=512,
                 weights_resident=None, approx_gelu=False,
                 vmem_limit_bytes=48 * 1024 * 1024):
    """Fused FeedForward.  Weights are pre-transposed: (in_features, out_features).

    tm:               target token-tile size (raise to ~1024 on v6e for bf16).
    weights_resident: None = auto (resident if the weight set fits VMEM),
                      True/False to force a path.
    vmem_limit_bytes: 48 MiB default is safe on v7x (64 MiB physical VMEM);
                      raise to 64–96 MiB on v5e/v6e if you want bigger tiles.
    """
    orig_shape = x.shape
    dim = orig_shape[-1]
    M = int(math.prod(orig_shape[:-1]))

    w2 = params['w2']                       # (inner, dim_out)
    inner, dim_out = w2.shape
    b2 = params['b2'].reshape(1, dim_out)

    x2 = x.reshape(M, dim)
    tm, Mp = _choose_m_tile(M, tm)
    if Mp != M:
        # TODO(synk): for production, pick tm from divisors of M at a higher
        # level so this HBM pad/slice round-trip never happens.
        x2 = jnp.pad(x2, ((0, Mp - M), (0, 0)))
    m_tiles = Mp // tm

    w_bytes = jnp.dtype(w2.dtype).itemsize
    x_bytes = jnp.dtype(x.dtype).itemsize
    n_w1 = 2 if glu else 1

    if weights_resident is None:
        # Conservative VMEM estimate: 2x-buffered x/out tiles + weights (x2 to
        # be safe about double-buffering) + f32 intermediates for hx/hg/g.
        weights_b = (n_w1 * (dim * inner + inner) + inner * dim_out + dim_out) * w_bytes
        io_b = 2 * tm * dim * x_bytes + 2 * tm * dim_out * x_bytes
        interm_b = (3 if glu else 2) * tm * inner * 4
        est = 2 * weights_b + io_b + interm_b
        weights_resident = est <= int(0.8 * vmem_limit_bytes)

    x_spec = pl.BlockSpec((tm, dim), lambda i, *a: (i, 0))
    out_spec = pl.BlockSpec((tm, dim_out), lambda i, *a: (i, 0))

    if weights_resident:
        # ---- resident path: weights DMA'd once, grid over token tiles only ----
        grid = (m_tiles,)
        w1_spec = pl.BlockSpec((dim, inner), lambda i: (0, 0))
        b1_spec = pl.BlockSpec((1, inner), lambda i: (0, 0))
        w2_spec = pl.BlockSpec((inner, dim_out), lambda i: (0, 0))
        b2_spec = pl.BlockSpec((1, dim_out), lambda i: (0, 0))
        scratch = []
        dims = ("parallel",)
        if glu:
            kernel = functools.partial(_ff_geglu_resident_kernel, approx_gelu=approx_gelu)
            in_specs = [x_spec, w1_spec, b1_spec, w1_spec, b1_spec, w2_spec, b2_spec]
            args = (x2, params['w1x'], params['b1x'].reshape(1, inner),
                    params['w1g'], params['b1g'].reshape(1, inner), w2, b2)
        else:
            kernel = functools.partial(_ff_gelu_resident_kernel, approx_gelu=approx_gelu)
            in_specs = [x_spec, w1_spec, b1_spec, w2_spec, b2_spec]
            args = (x2, params['w1'], params['b1'].reshape(1, inner), w2, b2)
    else:
        # ---- tiled-reduction fallback: stream weights over the inner dim ----
        tn = _pick_inner_tile(inner, tn_inner)
        grid = (m_tiles, inner // tn)
        w1_spec = pl.BlockSpec((dim, tn), lambda i, j: (0, j))
        b1_spec = pl.BlockSpec((1, tn), lambda i, j: (0, j))
        w2_spec = pl.BlockSpec((tn, dim_out), lambda i, j: (j, 0))
        b2_spec = pl.BlockSpec((1, dim_out), lambda i, j: (0, 0))
        scratch = [pltpu.VMEM((tm, dim_out), jnp.float32)]
        dims = ("parallel", "arbitrary")
        if glu:
            kernel = functools.partial(_ff_geglu_tiled_kernel, approx_gelu=approx_gelu)
            in_specs = [x_spec, w1_spec, b1_spec, w1_spec, b1_spec, w2_spec, b2_spec]
            args = (x2, params['w1x'], params['b1x'].reshape(1, inner),
                    params['w1g'], params['b1g'].reshape(1, inner), w2, b2)
        else:
            kernel = functools.partial(_ff_gelu_tiled_kernel, approx_gelu=approx_gelu)
            in_specs = [x_spec, w1_spec, b1_spec, w2_spec, b2_spec]
            args = (x2, params['w1'], params['b1'].reshape(1, inner), w2, b2)

    out = pl.pallas_call(
        kernel,
        out_shape=jax.ShapeDtypeStruct((Mp, dim_out), x.dtype),
        grid_spec=pltpu.PrefetchScalarGridSpec(
            num_scalar_prefetch=0,
            grid=grid,
            in_specs=in_specs,
            out_specs=out_spec,
            scratch_shapes=scratch),
        compiler_params=pltpu.CompilerParams(
            dimension_semantics=dims,
            vmem_limit_bytes=vmem_limit_bytes),
    )(*args)

    if Mp != M:
        out = out[:M]
    return out.reshape(orig_shape[:-1] + (dim_out,))
    # TODO(synk): nn.Dropout(p=0.0) in eval mode is an identity; omitted on purpose.


# ------------------------------ parameter init -------------------------------

def init_ff_params(key, dim, dim_out=None, mult=4, glu=True, dtype=jnp.float32):
    """Weights stored pre-transposed as (in_features, out_features) = nn.Linear.weight.T."""
    inner = int(dim * mult)
    dim_out = dim if dim_out is None else dim_out
    ks = jax.random.split(key, 8)

    def w(k, shape, fan_in):
        bound = 1.0 / math.sqrt(fan_in)
        return jax.random.uniform(k, shape, dtype, -bound, bound)

    if glu:
        # GEGLU's single nn.Linear(dim, 2*inner) split along its output features
        # into the value ("x") half and the gate half (same order as .chunk(2, -1)).
        return dict(
            w1x=w(ks[0], (dim, inner), dim), b1x=w(ks[1], (inner,), dim),
            w1g=w(ks[2], (dim, inner), dim), b1g=w(ks[3], (inner,), dim),
            w2=w(ks[4], (inner, dim_out), inner), b2=w(ks[5], (dim_out,), inner),
        )
    return dict(
        w1=w(ks[0], (dim, inner), dim), b1=w(ks[1], (inner,), dim),
        w2=w(ks[2], (inner, dim_out), inner), b2=w(ks[3], (dim_out,), inner),
    )


# ------------------------------ plain-JAX reference --------------------------

def reference_feed_forward(x, params, glu=True):
    if glu:
        h = x @ params['w1x'] + params['b1x']
        g = x @ params['w1g'] + params['b1g']
        y = h * _gelu(g)
    else:
        y = _gelu(x @ params['w1'] + params['b1'])
    return y @ params['w2'] + params['b2']


# ------------------------------------ main ------------------------------------

if __name__ == "__main__":
    # Small, lane-friendly shapes: tokens M = B*N = 256, model dim = 128,
    # inner dim = 4*128 = 512.
    B, N, dim = 2, 128, 128

    key = jax.random.PRNGKey(0)
    kx, kp1, kp2 = jax.random.split(key, 3)
    x = jax.random.normal(kx, (B, N, dim), jnp.float32)

    # 1) GEGLU (gated_ff=True), f32, resident-weights fast path (auto-selected).
    p_glu = init_ff_params(kp1, dim, glu=True)
    out_glu = jax.block_until_ready(feed_forward(x, p_glu, glu=True))
    ref_glu = reference_feed_forward(x, p_glu, glu=True)
    assert out_glu.shape == (B, N, dim)
    err = float(jnp.max(jnp.abs(out_glu - ref_glu)))
    assert err < 2e-2, err

    # 2) Plain GELU (module default glu=False), forced tiled-reduction path so
    #    the accumulator / pl.when machinery is exercised too.
    p_gelu = init_ff_params(kp2, dim, glu=False)
    out_gelu = jax.block_until_ready(
        feed_forward(x, p_gelu, glu=False, weights_resident=False, tn_inner=256))
    ref_gelu = reference_feed_forward(x, p_gelu, glu=False)
    assert out_gelu.shape == (B, N, dim)
    err2 = float(jnp.max(jnp.abs(out_gelu - ref_gelu)))
    assert err2 < 2e-2, err2

    # 3) Production path: bf16 activations/weights feeding the MXU directly
    #    (f32 accumulation inside the kernel).
    x_bf = x.astype(jnp.bfloat16)
    p_bf = {k: v.astype(jnp.bfloat16) for k, v in p_glu.items()}
    out_bf = jax.block_until_ready(feed_forward(x_bf, p_bf, glu=True))
    err3 = float(jnp.max(jnp.abs(out_bf.astype(jnp.float32) - ref_glu)))
    assert err3 < 1.5e-1, err3

    print("KERNEL_OK")
</pallas_src>

<mosaic_0001>
module attributes {stable_mosaic.version = 11 : i64} {
  func.func @_ff_geglu_resident_kernel(%arg0: i32, %arg1: memref<128x128xf32, #tpu.memory_space<vmem>>, %arg2: memref<128x512xf32, #tpu.memory_space<vmem>>, %arg3: memref<1x512xf32, #tpu.memory_space<vmem>>, %arg4: memref<128x512xf32, #tpu.memory_space<vmem>>, %arg5: memref<1x512xf32, #tpu.memory_space<vmem>>, %arg6: memref<512x128xf32, #tpu.memory_space<vmem>>, %arg7: memref<1x128xf32, #tpu.memory_space<vmem>>, %arg8: memref<128x128xf32, #tpu.memory_space<vmem>>) attributes {dimension_semantics = [#tpu.dimension_semantics<parallel>], iteration_bounds = array<i64: 2>, scalar_prefetch = 0 : i64, scratch_operands = 0 : i64, tpu.core_type = #tpu.core_type<tc>, window_params = [{transform_indices = @transform_0, window_bounds = array<i64: 128, 128>}, {pipeline_mode = #tpu.pipeline_mode<synchronous>, transform_indices = @transform_1, window_bounds = array<i64: 128, 512>}, {pipeline_mode = #tpu.pipeline_mode<synchronous>, transform_indices = @transform_2, window_bounds = array<i64: 1, 512>}, {pipeline_mode = #tpu.pipeline_mode<synchronous>, transform_indices = @transform_3, window_bounds = array<i64: 128, 512>}, {pipeline_mode = #tpu.pipeline_mode<synchronous>, transform_indices = @transform_4, window_bounds = array<i64: 1, 512>}, {pipeline_mode = #tpu.pipeline_mode<synchronous>, transform_indices = @transform_5, window_bounds = array<i64: 512, 128>}, {pipeline_mode = #tpu.pipeline_mode<synchronous>, transform_indices = @transform_6, window_bounds = array<i64: 1, 128>}, {transform_indices = @transform_7, window_bounds = array<i64: 128, 128>}]} {
    %c0 = arith.constant 0 : index
    %c0_0 = arith.constant 0 : index
    %0 = vector.load %arg1[%c0, %c0_0] : memref<128x128xf32, #tpu.memory_space<vmem>>, vector<128x128xf32>
    %c0_1 = arith.constant 0 : index
    %c0_2 = arith.constant 0 : index
    %1 = vector.load %arg2[%c0_1, %c0_2] : memref<128x512xf32, #tpu.memory_space<vmem>>, vector<128x512xf32>
    %cst = arith.constant dense<0.000000e+00> : vector<128x512xf32>
    %2 = tpu.matmul %0, %1, %cst {dimension_numbers = #tpu.dot_dimension_numbers<[1], [0], [0], [1], [0, 0, 1, 1], [], []>} : vector<128x128xf32>, vector<128x512xf32>, vector<128x512xf32> -> vector<128x512xf32>
    %c0_3 = arith.constant 0 : index
    %c0_4 = arith.constant 0 : index
    %3 = vector.load %arg3[%c0_3, %c0_4] : memref<1x512xf32, #tpu.memory_space<vmem>>, vector<1x512xf32>
    %4 = vector.broadcast %3 : vector<1x512xf32> to vector<128x512xf32>
    %5 = arith.addf %2, %4 : vector<128x512xf32>
    %c0_5 = arith.constant 0 : index
    %c0_6 = arith.constant 0 : index
    %6 = vector.load %arg4[%c0_5, %c0_6] : memref<128x512xf32, #tpu.memory_space<vmem>>, vector<128x512xf32>
    %cst_7 = arith.constant dense<0.000000e+00> : vector<128x512xf32>
    %7 = tpu.matmul %0, %6, %cst_7 {dimension_numbers = #tpu.dot_dimension_numbers<[1], [0], [0], [1], [0, 0, 1, 1], [], []>} : vector<128x128xf32>, vector<128x512xf32>, vector<128x512xf32> -> vector<128x512xf32>
    %c0_8 = arith.constant 0 : index
    %c0_9 = arith.constant 0 : index
    %8 = vector.load %arg5[%c0_8, %c0_9] : memref<1x512xf32, #tpu.memory_space<vmem>>, vector<1x512xf32>
    %9 = vector.broadcast %8 : vector<1x512xf32> to vector<128x512xf32>
    %10 = arith.addf %7, %9 : vector<128x512xf32>
    %cst_10 = arith.constant 5.000000e-01 : f32
    %11 = vector.broadcast %cst_10 : f32 to vector<128x512xf32>
    %12 = arith.mulf %11, %10 : vector<128x512xf32>
    %cst_11 = arith.constant 0.707106769 : f32
    %13 = vector.broadcast %cst_11 : f32 to vector<128x512xf32>
    %14 = arith.mulf %10, %13 : vector<128x512xf32>
    %15 = math.erf %14 : vector<128x512xf32>
    %cst_12 = arith.constant 1.000000e+00 : f32
    %16 = vector.broadcast %cst_12 : f32 to vector<128x512xf32>
    %17 = arith.addf %16, %15 : vector<128x512xf32>
    %18 = arith.mulf %12, %17 : vector<128x512xf32>
    %19 = arith.mulf %5, %18 : vector<128x512xf32>
    %c0_13 = arith.constant 0 : index
    %c0_14 = arith.constant 0 : index
    %20 = vector.load %arg6[%c0_13, %c0_14] : memref<512x128xf32, #tpu.memory_space<vmem>>, vector<512x128xf32>
    %cst_15 = arith.constant dense<0.000000e+00> : vector<128x128xf32>
    %21 = tpu.matmul %19, %20, %cst_15 {dimension_numbers = #tpu.dot_dimension_numbers<[1], [0], [0], [1], [0, 0, 1, 1], [], []>} : vector<128x512xf32>, vector<512x128xf32>, vector<128x128xf32> -> vector<128x128xf32>
    %c0_16 = arith.constant 0 : index
    %c0_17 = arith.constant 0 : index
    %22 = vector.load %arg7[%c0_16, %c0_17] : memref<1x128xf32, #tpu.memory_space<vmem>>, vector<1x128xf32>
    %23 = vector.broadcast %22 : vector<1x128xf32> to vector<128x128xf32>
    %24 = arith.addf %21, %23 : vector<128x128xf32>
    %c0_18 = arith.constant 0 : index
    %c0_19 = arith.constant 0 : index
    %25 = vector.load %arg8[%c0_18, %c0_19] : memref<128x128xf32, #tpu.memory_space<vmem>>, vector<128x128xf32>
    tpu.vector_store %arg8[%c0_18, %c0_19], %24 {strides = array<i32>} : memref<128x128xf32, #tpu.memory_space<vmem>>, vector<128x128xf32>,
    return
  }
  func.func @transform_0(%arg0: i32) -> (i32, i32) {
    %c0_i32 = arith.constant 0 : i32
    %c0_i32_0 = arith.constant 0 : i32
    return %arg0, %c0_i32 : i32, i32
  }
  func.func @transform_1(%arg0: i32) -> (i32, i32) {
    %c0_i32 = arith.constant 0 : i32
    %c0_i32_0 = arith.constant 0 : i32
    %c0_i32_1 = arith.constant 0 : i32
    return %c0_i32, %c0_i32_0 : i32, i32
  }
  func.func @transform_2(%arg0: i32) -> (i32, i32) {
    %c0_i32 = arith.constant 0 : i32
    %c0_i32_0 = arith.constant 0 : i32
    %c0_i32_1 = arith.constant 0 : i32
    return %c0_i32, %c0_i32_0 : i32, i32
  }
  func.func @transform_3(%arg0: i32) -> (i32, i32) {
    %c0_i32 = arith.constant 0 : i32
    %c0_i32_0 = arith.constant 0 : i32
    %c0_i32_1 = arith.constant 0 : i32
    return %c0_i32, %c0_i32_0 : i32, i32
  }
  func.func @transform_4(%arg0: i32) -> (i32, i32) {
    %c0_i32 = arith.constant 0 : i32
    %c0_i32_0 = arith.constant 0 : i32
    %c0_i32_1 = arith.constant 0 : i32
    return %c0_i32, %c0_i32_0 : i32, i32
  }
  func.func @transform_5(%arg0: i32) -> (i32, i32) {
    %c0_i32 = arith.constant 0 : i32
    %c0_i32_0 = arith.constant 0 : i32
    %c0_i32_1 = arith.constant 0 : i32
    return %c0_i32, %c0_i32_0 : i32, i32
  }
  func.func @transform_6(%arg0: i32) -> (i32, i32) {
    %c0_i32 = arith.constant 0 : i32
    %c0_i32_0 = arith.constant 0 : i32
    %c0_i32_1 = arith.constant 0 : i32
    return %c0_i32, %c0_i32_0 : i32, i32
  }
  func.func @transform_7(%arg0: i32) -> (i32, i32) {
    %c0_i32 = arith.constant 0 : i32
    %c0_i32_0 = arith.constant 0 : i32
    return %arg0, %c0_i32 : i32, i32
  }
}

</mosaic_0001>

<bundles_post_ra>
// kernel: tpu_custom_call.1
= control target key start
LH: loop header
LB: loop body
LE: loop exit
PB: predicated region body
PF: predicated region fallthrough
CT: control target
= control target key end

     0   :  { %s4107_s0 = inlined_call_operand.hbm [shape: f32[256,128], index: 0, kind: input, shape index: {}]   ;;  %s4108_s1 = inlined_call_operand.hbm [shape: f32[128,512], index: 1, kind: input, shape index: {}]   ;;  %s4109_s2 = inlined_call_operand.hbm [shape: f32[1,512], index: 2, kind: input, shape index: {}]   ;;  %s4110_s3 = inlined_call_operand.hbm [shape: f32[128,512], index: 3, kind: input, shape index: {}]   ;;  %s4111_s4 = inlined_call_operand.vmem [shape: f32[1,512], index: 4, kind: input, shape index: {}]   ;;  %s4112_s5 = inlined_call_operand.hbm [shape: f32[512,128], index: 5, kind: input, shape index: {}]   ;;  %s4113_s6 = inlined_call_operand.vmem [shape: f32[1,128], index: 6, kind: input, shape index: {}]   ;;  %s4114_s7 = inlined_call_operand.hbm [shape: f32[256,128], index: 7, kind: output, shape index: {}]  }
   0x1   :  { %4124 = sst [smem:[#allocation71_spill]] %s4108_s1 }
   0x2   :  { %12 = vsyncpa [#allocation3], 0 }
   0x3   :  { %14 = vsyncpa [#allocation3 + $0x1], 0 }
   0x4   :  { %15 = vsyncpa [#allocation6], 0 }
   0x5   :  { %16 = vsyncpa [#allocation9], 0 }
   0x6   :  { %17 = vsyncpa [#allocation4], 0 }
   0x7   :  { %19 = vsyncpa [#allocation4 + $0x1], 0  ;;  %s2739_s24 = smov 0   ;;  %s2741_s25 = smov 0  }
   0x8   :  { %s2743_s26 = smov 0   ;;  %s2745_s27 = smov 0  }
   0x9 LB: > { %s2760_s28 = sadd.s32 4294967295, %s2684_s27   ;;  %s2073_s29 = sadd.s32 4294967294, %s2684_s27   ;;  %s2684_s27 = sphi %s2745_s27, %s4260_s27   ;;  %s2680_s26 = sphi %s2743_s26, %s4259_s26   ;;  %s2676_s25 = sphi %s2741_s25, %s4258_s25   ;;  %s2672_s24 = sphi %s2739_s24, %s4257_s24  }
   0xa   : > { %p45_p0 = scmp.ne.s32.totalorder %s2676_s25, %s2672_s24  ;;  %p4115_p1 = scmp.eq.s32.totalorder %s2760_s28, 0 }
   0xb   : > { %p201_p3 = scmp.eq.s32.totalorder %s2073_s29, 1  ;;  %p2074_p5 = scmp.ge.s32.totalorder %s2684_s27, 1 }
   0xc   : > { %p2769_p4 = por %p4115_p1, %p45_p0  ;;  %p208_p7 = scmp.lt.s32.totalorder %s2684_s27, 3 }
   0xd   : > { %p2774_p6 = por %p201_p3, %p45_p0  ;;  %s2686_s10 = smov [#allocation5]  }
   0xe   : > { %s4125_s30 = scalar_select %p2769_p4, 1, 0 }
   0xf   : > { %s4126_s8 = scalar_select %p2774_p6, 1, 0 }
  0x10   : > { %p2779_p8 = pnand %p2074_p5, %p208_p7  ;;  %s220_s11 = sshll.u32 %s2686_s10, 4  ;;  %s221_s11 = int_to_ptr.vmem [resolvable:$true] %s220_s11 }
  0x11   : > { %s2687_s13 = smov [#allocation8]   ;;  %s2688_s15 = smov [#allocation7]  }
  0x12   : > { %s4127_s9 = scalar_select %p2779_p8, 1, 0 }
  0x13   : > { %p2278_p9 = pneg %p2779_p8  ;;  %s244_s14 = sshll.u32 %s2687_s13, 4  ;;  %s245_s14 = int_to_ptr.vmem [resolvable:$true] %s244_s14 }
  0x14   : > { %s234_s16 = sshll.u32 %s2688_s15, 4  ;;  %s2491_s17 = scalar_lea.vmem %s221_s11, 8192  ;;  %s235_s16 = int_to_ptr.vmem [resolvable:$true] %s234_s16 }
  0x15   : > { %p2788_p11 = pnand %p2278_p9, %p4115_p1  ;;  %p2492_p13 = scmp.ne.s32.totalorder %s221_s11, %s2491_s17 }
  0x16   : > { %p2499_p5 = scmp.lt.s32.totalorder %s221_s11, %s221_s11  ;;  %p2500_p7 = scmp.lt.s32.totalorder %s2491_s17, %s2491_s17 }
  0x17   : > { %p2482_p12 = pneg %p2788_p11 }
  0x18   : > { %p2501_p9 = por %p2500_p7, %p2499_p5 }
  0x19   : > { %p2494_p0 = pnand %p2492_p13, %p2482_p12 }
  0x1b   : > { %p2495_p3 = pneg %p2494_p0 }
  0x1d   : > { %p2502_p10 = pnand %p2501_p9, %p2495_p3 }
  0x1f   : > { %2505 = shalt.err (!%p2502_p10)
}
  0x20   : > { %s2689_s18 = smov 512   ;;  %s2690_s19 = smov 32  }
  0x21   : > { %s4129_s1 = sld [smem:[#allocation71_spill]]  ;;  %s2517_s22 = scalar_lea.vmem %s245_s14, 8192 }
  0x22   : > { %p2518_p1 = scmp.ne.s32.totalorder %s245_s14, %s2517_s22  ;;  %p2525_p2 = scmp.lt.s32.totalorder %s245_s14, %s245_s14 }
  0x23   : > { %p2526_p6 = scmp.lt.s32.totalorder %s2517_s22, %s2517_s22 }
  0x24   : > { %p2520_p13 = pnand %p2518_p1, %p2482_p12 }
  0x25   : > { %p2527_p5 = por %p2526_p6, %p2525_p2 }
  0x26   : > { %p2521_p0 = pneg %p2520_p13 }
  0x27   : > { %2281 = dma.hbm_to_vmem [thread:$0]  (!%p2788_p11), %s4129_s1, 8192, %s221_s11, [#allocation6], %s2689_s18, %s2689_s18, %s2690_s19  }
  0x28   : > { %p2528_p3 = pnand %p2527_p5, %p2521_p0 }
  0x2a   : > { %2531 = shalt.err (!%p2528_p3)
}
  0x2b   : > { %2287 = dma.hbm_to_vmem [thread:$0]  (!%p2788_p11), %s4110_s3, 8192, %s245_s14, [#allocation9], %s2689_s18, %s2689_s18, %s2690_s19  }
  0x2c   : > { %s2543_s10 = scalar_lea.vmem %s235_s16, 64  ;;  %p2551_p9 = scmp.lt.s32.totalorder %s235_s16, %s235_s16 }
  0x2d   : > { %p2544_p10 = scmp.ne.s32.totalorder %s235_s16, %s2543_s10  ;;  %p2552_p13 = scmp.lt.s32.totalorder %s2543_s10, %s2543_s10 }
  0x2f   : > { %p2546_p7 = pnand %p2544_p10, %p2482_p12  ;;  %p2553_p4 = por %p2552_p13, %p2551_p9 }
  0x31   : > { %p2547_p1 = pneg %p2546_p7 }
  0x33   : > { %p2554_p2 = pnand %p2553_p4, %p2547_p1 }
  0x35   : > { %2557 = shalt.err (!%p2554_p2)
}
  0x36   : > { %2284 = dma.hbm_to_vmem [thread:$0]  (!%p2788_p11), %s4109_s2, 64, %s235_s16, [#allocation6]  }
  0x37   : > { %s2691_s14 = smov [#allocation10]  }
  0x38   : > { %s260_s15 = sshll.u32 %s2691_s14, 4  ;;  %s261_s15 = int_to_ptr.vmem [resolvable:$true] %s260_s15 }
  0x39   : > { %s2569_s17 = scalar_lea.vmem %s261_s15, 8192  ;;  %p2577_p3 = scmp.lt.s32.totalorder %s261_s15, %s261_s15 }
  0x3a   : > { %p2570_p6 = scmp.ne.s32.totalorder %s261_s15, %s2569_s17  ;;  %p2578_p10 = scmp.lt.s32.totalorder %s2569_s17, %s2569_s17 }
  0x3c   : > { %p2572_p0 = pnand %p2570_p6, %p2482_p12  ;;  %p2579_p4 = por %p2578_p10, %p2577_p3 }
  0x3e   : > { %p2573_p5 = pneg %p2572_p0 }
  0x40   : > { %p2580_p7 = pnand %p2579_p4, %p2573_p5 }
  0x42   : > { %2583 = shalt.err (!%p2580_p7)
}
  0x43   : > { %s4117_s18 = smov 128   ;;  %s4118_s16 = smov 8  }
  0x44   : > { %2290 = dma.hbm_to_vmem [thread:$0]  (!%p2788_p11), %s4112_s5, 8192, %s261_s15, [#allocation9], %s4117_s18, %s4117_s18, %s4118_s16  }
  0x45   : > { %s2830_s21 = sadd.s32 1, %s2684_s27   ;;  %s32_s23 = sadd.s32 1, %s2680_s26 }
  0x46   : > { %s29_s22 = ssub.s32 %s2684_s27, %s2830_s21  ;;  %p39_p1 = scmp.ne.s32.totalorder %s2680_s26, %s2676_s25 }
  0x47   : > { %p30_p12 = scmp.eq.s32.totalorder %s29_s22, 0  ;;  %p40_p9 = scmp.eq.s32.totalorder %s2684_s27, 0 }
  0x48   : > { %p4130_p2 = scmp.eq.s32.totalorder %s2760_s28, 1  ;;  %p2303_p0 = scmp.lt.s32.totalorder %s2684_s27, 2 }
  0x49   : > { %s2839_s29 = scalar_select %p30_p12, %s2680_s26, %s32_s23  }
  0x4a   : > { %p41_p13 = por %p40_p9, %p39_p1  ;;  %p2843_p6 = por %p4130_p2, %p39_p1 }
  0x4b   : > { %s277_s10 = sand.u32 1, %s2680_s26   ;;  %s2096_s13 = sshll.u32 %s2684_s27, 11 }
  0x4c   : > { %s4131_s12 = scalar_select %p2843_p6, 1, 0 }
  0x4d   : > { %s2080_s11 = sshll.u32 %s277_s10, 7  ;;  %s2853_s17 = scalar_lea.hbm %s4107_s0, %s2096_s13 }
  0x4e   : > { %s281_s19 = scalar_lea.vmem [#allocation2], %s2080_s11  ;;  %p2857_p11 = pnand %p2303_p0, %p41_p13 }
  0x4f   : > { %s288_s20 = sshll.u32 %s281_s19, 4  ;;  %s2861_s23 = scalar_lea.sflag [#allocation3], %s277_s10  ;;  %s2855_s20 = int_to_ptr.vmem [resolvable:$true] %s288_s20 }
  0x50   : > { %s2584_s18 = scalar_lea.hbm %s2853_s17, 2048  ;;  %p2586_p3 = pneg %p2857_p11 }
  0x51   : > { %p2585_p5 = scmp.ne.s32.totalorder %s2853_s17, %s2584_s18  ;;  %s2589_s11 = scalar_lea.hbm %s4107_s0, 4096 }
  0x52   : > { %p2590_p7 = scmp.lt.s32.totalorder %s2853_s17, %s4107_s0  ;;  %p2591_p12 = scmp.lt.s32.totalorder %s2589_s11, %s2584_s18 }
  0x53   : > { %p2587_p10 = pnand %p2586_p3, %p2585_p5 }
  0x54   : > { %p2592_p1 = por %p2591_p12, %p2590_p7 }
  0x55   : > { %p2588_p4 = pneg %p2587_p10 }
  0x57   : > { %p2593_p9 = pnand %p2592_p1, %p2588_p4 }
  0x59   : > { %2596 = shalt.err (!%p2593_p9)
}
  0x5a   : > { %s2597_s10 = scalar_lea.vmem %s2855_s20, 2048  ;;  %s2694_s16 = smov [#allocation2]  }
  0x5b   : > { %p2598_p13 = scmp.ne.s32.totalorder %s2855_s20, %s2597_s10  ;;  %s2602_s1 = sshll.u32 %s2694_s16, 4  ;;  %s2603_s1 = int_to_ptr.vmem [resolvable:$false] %s2602_s1 }
  0x5c   : > { %s2604_s13 = scalar_lea.vmem %s2603_s1, 4096  ;;  %p2605_p5 = scmp.lt.s32.totalorder %s2855_s20, %s2603_s1 }
  0x5d   : > { %p2600_p2 = pnand %p2598_p13, %p2586_p3  ;;  %p2606_p10 = scmp.lt.s32.totalorder %s2604_s13, %s2597_s10 }
  0x5f   : > { %p2601_p0 = pneg %p2600_p2  ;;  %p2607_p6 = por %p2606_p10, %p2605_p5 }
  0x61   : > { %p2608_p8 = pnand %p2607_p6, %p2601_p0 }
  0x63   : > { %2611 = shalt.err (!%p2608_p8)
}
  0x64   : > { %s4133_s18 = smov 8   ;;  %s4134_s14 = smov 128  }
  0x65   : > { %2294 = dma.hbm_to_vmem [thread:$0]  (!%p2857_p11), %s2853_s17, 2048, %s2855_s20, %s2861_s23, %s4134_s14, %s4134_s14, %s4133_s18  }
  0x66   : > { %p4135_p3 = scmp.ne.s32.totalorder %s4127_s9, 0 }
  0x68   : > { %300 = sbr.rel (%p4135_p3) target bundleno = 751 (0x2ef), region = 48 }
  0x6d   : > { %s2888_s16 = sand.u32 1, %s2676_s25   ;;  %p4136_p8 = scmp.ne.s32.totalorder %s4125_s30, 0 }
  0x6e   : > { %s2084_s1 = sshll.u32 %s2888_s16, 7  ;;  %s303_s11 = scalar_lea.sflag [#allocation3], %s2888_s16 }
  0x6f   : > { %s2894_s22 = scalar_lea.vmem [#allocation2], %s2084_s1 }
  0x70   : > { %2655 = dma.done.wait (%p4136_p8), %s303_s11, 2048  }
  0x71   : > { %2657 = vsyncadd (%p4136_p8), %s303_s11, 4294965248  ;;  %p4137_p6 = scmp.eq.s32.totalorder %s2760_s28, 0 }
  0x73   : > { %2659 = dma.done.wait (%p4137_p6), [#allocation6], 8256   ;;  %p4138_p11 = pmov %p4137_p6 }
  0x74   : > { %p4139_p4 = pmov %p4137_p6 }
  0x75   : > { %2661 = vsyncadd (%p4138_p11), [#allocation6], 4294959040 }
  0x76   : > { %2663 = dma.done.wait (%p4139_p4), [#allocation9], 16384   ;;  %p4140_p7 = pmov %p4139_p4 }
  0x77   : > { %v2695_v0 = vmov 0.0   ;;  %v432_v1 = vld [vmem:[#allocation5 + $0x1e8] sm:$0xff]  ;;  %v434_v2 = vld [vmem:[#allocation5 + $0x1f8] sm:$0xff]  ;;  %v431_v3 = vld [vmem:[#allocation5 + $0x1e0] sm:$0xff]  ;;  %s4024_s23 = scalar_lea.vmem [#allocation11], %s2084_s1  ;;  %s2097_s15 = sshll.u32 %s2760_s28, 11 }
  0x78   : > { %2665 = vsyncadd (%p4140_p7), [#allocation9], 4294950912  ;;  %521 = vmatprep.mubr.f32.mxu0 %v2695_v0  ;;  %682 = vmatprep.mubr.f32.mxu1 %v2695_v0  ;;  %v433_v4 = vld [vmem:[#allocation5 + $0x1f0] sm:$0xff]  ;;  %v428_v5 = vld [vmem:[#allocation5 + $0x1c8] sm:$0xff]  ;;  %s1962_s19 = sshll.u32 %s4024_s23, 4  ;;  %s4061_s18 = scalar_lea.hbm %s4114_s7, %s2097_s15  ;;  %s4063_s19 = int_to_ptr.vmem [resolvable:$true] %s1962_s19 }
  0x79   : > { %457 = vmatprep.subr.mxu0 %v432_v1  ;;  %618 = vmatprep.subr.mxu1 %v434_v2  ;;  %v430_v6 = vld [vmem:[#allocation5 + $0x1d8] sm:$0xff]  ;;  %v427_v7 = vld [vmem:[#allocation5 + $0x1c0] sm:$0xff]  ;;  %v429_v8 = vld [vmem:[#allocation5 + $0x1d0] sm:$0xff]  ;;  %s1949_s14 = scalar_lea.sflag [#allocation4], %s2888_s16  ;;  %s2612_s1 = scalar_lea.vmem %s4063_s19, 2048 }
  0x7a   : > { %458 = vmatpush1.msra.mxu0 %v431_v3  ;;  %619 = vmatpush1.msra.mxu1 %v433_v4  ;;  %v424_v9 = vld [vmem:[#allocation5 + $0x1a8] sm:$0xff]  ;;  %v426_v10 = vld [vmem:[#allocation5 + $0x1b8] sm:$0xff]  ;;  %v423_v11 = vld [vmem:[#allocation5 + $0x1a0] sm:$0xff]  ;;  %p2613_p12 = scmp.ne.s32.totalorder %s4063_s19, %s2612_s1  ;;  %p4254_p1 = scmp.ne.s32.totalorder %s4131_s12, 0 }
  0x7b   : > { %459 = vmatprep.subr.mxu0 %v428_v5  ;;  %620 = vmatprep.subr.mxu1 %v430_v6  ;;  %v425_v12 = vld [vmem:[#allocation5 + $0x1b0] sm:$0xff]  ;;  %v420_v13 = vld [vmem:[#allocation5 + $0x188] sm:$0xff]  ;;  %v422_v14 = vld [vmem:[#allocation5 + $0x198] sm:$0xff]  ;;  %s2696_s28 = smov [#allocation11]  }
  0x7c   : > { %460 = vmatpush1.msra.mxu0 %v427_v7  ;;  %621 = vmatpush1.msra.mxu1 %v429_v8  ;;  %v419_v15 = vld [vmem:[#allocation5 + $0x180] sm:$0xff]  ;;  %v421_v16 = vld [vmem:[#allocation5 + $0x190] sm:$0xff]  ;;  %v416_v17 = vld [vmem:[#allocation5 + $0x168] sm:$0xff]  ;;  %p2614_p9 = pnand %p2613_p12, %p4254_p1  ;;  %s2616_s11 = sshll.u32 %s2696_s28, 4  ;;  %s2617_s11 = int_to_ptr.vmem [resolvable:$false] %s2616_s11 }
  0x7d   : > { %461 = vmatprep.subr.mxu0 %v424_v9  ;;  %622 = vmatprep.subr.mxu1 %v426_v10  ;;  %v418_v18 = vld [vmem:[#allocation5 + $0x178] sm:$0xff]  ;;  %v415_v19 = vld [vmem:[#allocation5 + $0x160] sm:$0xff]  ;;  %v417_v20 = vld [vmem:[#allocation5 + $0x170] sm:$0xff]  ;;  %p2619_p2 = scmp.lt.s32.totalorder %s4063_s19, %s2617_s11 }
  0x7e   : > { %462 = vmatpush1.msra.mxu0 %v423_v11  ;;  %623 = vmatpush1.msra.mxu1 %v425_v12  ;;  %v412_v21 = vld [vmem:[#allocation5 + $0x148] sm:$0xff]  ;;  %v414_v22 = vld [vmem:[#allocation5 + $0x158] sm:$0xff]  ;;  %v411_v23 = vld [vmem:[#allocation5 + $0x140] sm:$0xff]  ;;  %p2615_p13 = pneg %p2614_p9 }
  0x7f   : > { %463 = vmatprep.subr.mxu0 %v420_v13  ;;  %624 = vmatprep.subr.mxu1 %v422_v14  ;;  %v413_v24 = vld [vmem:[#allocation5 + $0x150] sm:$0xff]  ;;  %v408_v25 = vld [vmem:[#allocation5 + $0x128] sm:$0xff]  ;;  %v410_v26 = vld [vmem:[#allocation5 + $0x138] sm:$0xff] }
  0x80   : > { %464 = vmatpush1.msra.mxu0 %v419_v15  ;;  %625 = vmatpush1.msra.mxu1 %v421_v16  ;;  %v407_v27 = vld [vmem:[#allocation5 + $0x120] sm:$0xff]  ;;  %v409_v28 = vld [vmem:[#allocation5 + $0x130] sm:$0xff]  ;;  %v404_v29 = vld [vmem:[#allocation5 + $0x108] sm:$0xff] }
  0x81   : > { %465 = vmatprep.subr.mxu0 %v416_v17  ;;  %626 = vmatprep.subr.mxu1 %v418_v18  ;;  %v406_v30 = vld [vmem:[#allocation5 + $0x118] sm:$0xff]  ;;  %v403_v31 = vld [vmem:[#allocation5 + $0x100] sm:$0xff]  ;;  %v405_v32 = vld [vmem:[#allocation5 + $0x110] sm:$0xff] }
  0x82   : > { %466 = vmatpush1.msra.mxu0 %v415_v19  ;;  %627 = vmatpush1.msra.mxu1 %v417_v20  ;;  %v400_v33 = vld [vmem:[#allocation5 + $0xe8] sm:$0xff]  ;;  %v402_v34 = vld [vmem:[#allocation5 + $0xf8] sm:$0xff]  ;;  %v399_v35 = vld [vmem:[#allocation5 + $0xe0] sm:$0xff] }
  0x83   : > { %467 = vmatprep.subr.mxu0 %v412_v21  ;;  %628 = vmatprep.subr.mxu1 %v414_v22  ;;  %v401_v36 = vld [vmem:[#allocation5 + $0xf0] sm:$0xff]  ;;  %v396_v37 = vld [vmem:[#allocation5 + $0xc8] sm:$0xff]  ;;  %v398_v38 = vld [vmem:[#allocation5 + $0xd8] sm:$0xff] }
  0x84   : > { %468 = vmatpush1.msra.mxu0 %v411_v23  ;;  %629 = vmatpush1.msra.mxu1 %v413_v24  ;;  %v395_v39 = vld [vmem:[#allocation5 + $0xc0] sm:$0xff]  ;;  %v397_v40 = vld [vmem:[#allocation5 + $0xd0] sm:$0xff]  ;;  %v392_v41 = vld [vmem:[#allocation5 + $0xa8] sm:$0xff] }
  0x85   : > { %469 = vmatprep.subr.mxu0 %v408_v25  ;;  %630 = vmatprep.subr.mxu1 %v410_v26  ;;  %v394_v42 = vld [vmem:[#allocation5 + $0xb8] sm:$0xff]  ;;  %v391_v43 = vld [vmem:[#allocation5 + $0xa0] sm:$0xff]  ;;  %v393_v44 = vld [vmem:[#allocation5 + $0xb0] sm:$0xff] }
  0x86   : > { %470 = vmatpush1.msra.mxu0 %v407_v27  ;;  %631 = vmatpush1.msra.mxu1 %v409_v28  ;;  %v388_v45 = vld [vmem:[#allocation5 + $0x88] sm:$0xff]  ;;  %v390_v46 = vld [vmem:[#allocation5 + $0x98] sm:$0xff]  ;;  %v387_v47 = vld [vmem:[#allocation5 + $0x80] sm:$0xff] }
  0x87   : > { %471 = vmatprep.subr.mxu0 %v404_v29  ;;  %632 = vmatprep.subr.mxu1 %v406_v30  ;;  %v389_v48 = vld [vmem:[#allocation5 + $0x90] sm:$0xff]  ;;  %v384_v49 = vld [vmem:[#allocation5 + $0x68] sm:$0xff]  ;;  %v386_v50 = vld [vmem:[#allocation5 + $0x78] sm:$0xff] }
  0x88   : > { %472 = vmatpush1.msra.mxu0 %v403_v31  ;;  %633 = vmatpush1.msra.mxu1 %v405_v32  ;;  %v383_v51 = vld [vmem:[#allocation5 + $0x60] sm:$0xff]  ;;  %v385_v52 = vld [vmem:[#allocation5 + $0x70] sm:$0xff]  ;;  %v380_v53 = vld [vmem:[#allocation5 + $0x48] sm:$0xff] }
  0x89   : > { %473 = vmatprep.subr.mxu0 %v400_v33  ;;  %634 = vmatprep.subr.mxu1 %v402_v34  ;;  %v382_v54 = vld [vmem:[#allocation5 + $0x58] sm:$0xff]  ;;  %v379_v55 = vld [vmem:[#allocation5 + $0x40] sm:$0xff]  ;;  %v381_v56 = vld [vmem:[#allocation5 + $0x50] sm:$0xff] }
  0x8a   : > { %474 = vmatpush1.msra.mxu0 %v399_v35  ;;  %635 = vmatpush1.msra.mxu1 %v401_v36  ;;  %v376_v57 = vld [vmem:[#allocation5 + $0x28] sm:$0xff]  ;;  %v378_v58 = vld [vmem:[#allocation5 + $0x38] sm:$0xff]  ;;  %v375_v59 = vld [vmem:[#allocation5 + $0x20] sm:$0xff] }
  0x8b   : > { %475 = vmatprep.subr.mxu0 %v396_v37  ;;  %636 = vmatprep.subr.mxu1 %v398_v38  ;;  %v377_v60 = vld [vmem:[#allocation5 + $0x30] sm:$0xff]  ;;  %v372_v61 = vld [vmem:[#allocation5 + $0x8] sm:$0xff]  ;;  %v374_v62 = vld [vmem:[#allocation5 + $0x18] sm:$0xff] }
  0x8c   : > { %476 = vmatpush1.msra.mxu0 %v395_v39  ;;  %637 = vmatpush1.msra.mxu1 %v397_v40  ;;  %v371_v63 = vld [vmem:[#allocation5] sm:$0xff]  ;;  %v373_v1 = vld [vmem:[#allocation5 + $0x10] sm:$0xff]  ;;  %v2916_v7 = vld [vmem:[%s2894_s22 + $0x8] sm:$0xff] }
  0x8d   : > { %477 = vmatprep.subr.mxu0 %v392_v41  ;;  %638 = vmatprep.subr.mxu1 %v394_v42  ;;  %v2911_v2 = vld [vmem:[%s2894_s22] sm:$0xff]  ;;  %v840_v3 = vld [vmem:[#allocation8 + $0x1e8] sm:$0xff]  ;;  %v841_v6 = vld [vmem:[#allocation8 + $0x1f0] sm:$0xff] }
  0x8e   : > { %478 = vmatpush1.msra.mxu0 %v391_v43  ;;  %639 = vmatpush1.msra.mxu1 %v393_v44  ;;  %v842_v4 = vld [vmem:[#allocation8 + $0x1f8] sm:$0xff]  ;;  %v839_v5 = vld [vmem:[#allocation8 + $0x1e0] sm:$0xff]  ;;  %v836_v8 = vld [vmem:[#allocation8 + $0x1c8] sm:$0xff] }
  0x8f   : > { %479 = vmatprep.subr.mxu0 %v388_v45  ;;  %640 = vmatprep.subr.mxu1 %v390_v46  ;;  %v838_v9 = vld [vmem:[#allocation8 + $0x1d8] sm:$0xff]  ;;  %v835_v10 = vld [vmem:[#allocation8 + $0x1c0] sm:$0xff]  ;;  %v837_v11 = vld [vmem:[#allocation8 + $0x1d0] sm:$0xff] }
  0x90   : > { %480 = vmatpush1.msra.mxu0 %v387_v47  ;;  %641 = vmatpush1.msra.mxu1 %v389_v48  ;;  %v2923_v12 = vld [vmem:[%s2894_s22 + $0x10] sm:$0xff]  ;;  %v834_v14 = vld [vmem:[#allocation8 + $0x1b8] sm:$0xff]  ;;  %v831_v15 = vld [vmem:[#allocation8 + $0x1a0] sm:$0xff] }
  0x91   : > { %481 = vmatprep.subr.mxu0 %v384_v49  ;;  %642 = vmatprep.subr.mxu1 %v386_v50  ;;  %v832_v13 = vld [vmem:[#allocation8 + $0x1a8] sm:$0xff]  ;;  %v833_v16 = vld [vmem:[#allocation8 + $0x1b0] sm:$0xff]  ;;  %v830_v19 = vld [vmem:[#allocation8 + $0x198] sm:$0xff] }
  0x92   : > { %482 = vmatpush1.msra.mxu0 %v383_v51  ;;  %643 = vmatpush1.msra.mxu1 %v385_v52  ;;  %v2930_v17 = vld [vmem:[%s2894_s22 + $0x18] sm:$0xff]  ;;  %v828_v18 = vld [vmem:[#allocation8 + $0x188] sm:$0xff]  ;;  %v827_v20 = vld [vmem:[#allocation8 + $0x180] sm:$0xff] }
  0x93   : > { %483 = vmatprep.subr.mxu0 %v380_v53  ;;  %644 = vmatprep.subr.mxu1 %v382_v54  ;;  %v829_v21 = vld [vmem:[#allocation8 + $0x190] sm:$0xff]  ;;  %v2937_v22 = vld [vmem:[%s2894_s22 + $0x20] sm:$0xff]  ;;  %v824_v23 = vld [vmem:[#allocation8 + $0x168] sm:$0xff] }
  0x94   : > { %484 = vmatpush1.msra.mxu0 %v379_v55  ;;  %645 = vmatpush1.msra.mxu1 %v381_v56  ;;  %v826_v24 = vld [vmem:[#allocation8 + $0x178] sm:$0xff]  ;;  %v823_v25 = vld [vmem:[#allocation8 + $0x160] sm:$0xff]  ;;  %v825_v26 = vld [vmem:[#allocation8 + $0x170] sm:$0xff] }
  0x95   : > { %485 = vmatprep.subr.mxu0 %v376_v57  ;;  %646 = vmatprep.subr.mxu1 %v378_v58  ;;  %v2944_v27 = vld [vmem:[%s2894_s22 + $0x28] sm:$0xff]  ;;  %v822_v29 = vld [vmem:[#allocation8 + $0x158] sm:$0xff]  ;;  %v821_v31 = vld [vmem:[#allocation8 + $0x150] sm:$0xff] }
  0x96   : > { %486 = vmatpush1.msra.mxu0 %v375_v59  ;;  %647 = vmatpush1.msra.mxu1 %v377_v60  ;;  %v820_v28 = vld [vmem:[#allocation8 + $0x148] sm:$0xff]  ;;  %v819_v30 = vld [vmem:[#allocation8 + $0x140] sm:$0xff]  ;;  %v818_v34 = vld [vmem:[#allocation8 + $0x138] sm:$0xff] }
  0x97   : > { %487 = vmatprep.subr.mxu0 %v372_v61  ;;  %648 = vmatprep.subr.mxu1 %v374_v62  ;;  %v2951_v32 = vld [vmem:[%s2894_s22 + $0x30] sm:$0xff]  ;;  %v815_v35 = vld [vmem:[#allocation8 + $0x120] sm:$0xff]  ;;  %v2958_v37 = vld [vmem:[%s2894_s22 + $0x38] sm:$0xff] }
  0x98   : > { %488 = vmatpush1.msra.mxu0 %v371_v63  ;;  %649 = vmatpush1.msra.mxu1 %v373_v1  ;;  %v816_v33 = vld [vmem:[#allocation8 + $0x128] sm:$0xff]  ;;  %v817_v36 = vld [vmem:[#allocation8 + $0x130] sm:$0xff]  ;;  %v814_v39 = vld [vmem:[#allocation8 + $0x118] sm:$0xff] }
  0x99   : > { %522 = vmatmul.mubr.f32.vlgmr.msra.gmra.mxu0 %v2911_v2  ;;  %683 = vmatmul.mubr.f32.vlgmr.msra.gmra.mxu1 %v2911_v2  ;;  %v812_v38 = vld [vmem:[#allocation8 + $0x108] sm:$0xff]  ;;  %v811_v40 = vld [vmem:[#allocation8 + $0x100] sm:$0xff]  ;;  %v813_v41 = vld [vmem:[#allocation8 + $0x110] sm:$0xff] }
  0x9a   : > { %865 = vmatprep.subr.mxu0 %v840_v3  ;;  %1026 = vmatprep.subr.mxu1 %v842_v4  ;;  %v2965_v42 = vld [vmem:[%s2894_s22 + $0x40] sm:$0xff]  ;;  %v808_v43 = vld [vmem:[#allocation8 + $0xe8] sm:$0xff]  ;;  %v809_v46 = vld [vmem:[#allocation8 + $0xf0] sm:$0xff] }
  0x9b   : > { %866 = vmatpush1.msra.mxu0 %v839_v5  ;;  %527 = vmatprep.mubr.f32.mxu0 %v2695_v0  ;;  %v810_v44 = vld [vmem:[#allocation8 + $0xf8] sm:$0xff]  ;;  %v807_v45 = vld [vmem:[#allocation8 + $0xe0] sm:$0xff]  ;;  %v804_v48 = vld [vmem:[#allocation8 + $0xc8] sm:$0xff] }
  0x9c   : > { %688 = vmatprep.mubr.f32.mxu1 %v2695_v0  ;;  %1027 = vmatpush1.msra.mxu1 %v841_v6  ;;  %v2972_v47 = vld [vmem:[%s2894_s22 + $0x48] sm:$0xff]  ;;  %v806_v49 = vld [vmem:[#allocation8 + $0xd8] sm:$0xff]  ;;  %v805_v51 = vld [vmem:[#allocation8 + $0xd0] sm:$0xff] }
  0x9d   : > { %528 = vmatmul.mubr.f32.gmra.mxu0 %v2916_v7  ;;  %689 = vmatmul.mubr.f32.gmra.mxu1 %v2916_v7  ;;  %v803_v50 = vld [vmem:[#allocation8 + $0xc0] sm:$0xff]  ;;  %v2979_v52 = vld [vmem:[%s2894_s22 + $0x50] sm:$0xff]  ;;  %v802_v54 = vld [vmem:[#allocation8 + $0xb8] sm:$0xff] }
  0x9e   : > { %867 = vmatprep.subr.mxu0 %v836_v8  ;;  %1028 = vmatprep.subr.mxu1 %v838_v9  ;;  %v800_v53 = vld [vmem:[#allocation8 + $0xa8] sm:$0xff]  ;;  %v799_v55 = vld [vmem:[#allocation8 + $0xa0] sm:$0xff]  ;;  %v801_v56 = vld [vmem:[#allocation8 + $0xb0] sm:$0xff] }
  0x9f   : > { %868 = vmatpush1.msra.mxu0 %v835_v10  ;;  %533 = vmatprep.mubr.f32.mxu0 %v2695_v0  ;;  %v2986_v57 = vld [vmem:[%s2894_s22 + $0x58] sm:$0xff]  ;;  %v796_v58 = vld [vmem:[#allocation8 + $0x88] sm:$0xff]  ;;  %v795_v60 = vld [vmem:[#allocation8 + $0x80] sm:$0xff] }
  0xa0   : > { %694 = vmatprep.mubr.f32.mxu1 %v2695_v0  ;;  %1029 = vmatpush1.msra.mxu1 %v837_v11  ;;  %v798_v59 = vld [vmem:[#allocation8 + $0x98] sm:$0xff]  ;;  %v797_v61 = vld [vmem:[#allocation8 + $0x90] sm:$0xff]  ;;  %v792_v63 = vld [vmem:[#allocation8 + $0x68] sm:$0xff] }
  0xa1   : > { %534 = vmatmul.mubr.f32.gmra.mxu0 %v2923_v12  ;;  %695 = vmatmul.mubr.f32.gmra.mxu1 %v2923_v12  ;;  %v2993_v62 = vld [vmem:[%s2894_s22 + $0x60] sm:$0xff]  ;;  %v793_v4 = vld [vmem:[#allocation8 + $0x70] sm:$0xff]  ;;  %v3000_v5 = vld [vmem:[%s2894_s22 + $0x68] sm:$0xff] }
  0xa2   : > { %869 = vmatprep.subr.mxu0 %v832_v13  ;;  %1030 = vmatprep.subr.mxu1 %v834_v14  ;;  %v794_v1 = vld [vmem:[#allocation8 + $0x78] sm:$0xff]  ;;  %v791_v3 = vld [vmem:[#allocation8 + $0x60] sm:$0xff]  ;;  %v788_v6 = vld [vmem:[#allocation8 + $0x48] sm:$0xff] }
  0xa3   : > { %870 = vmatpush1.msra.mxu0 %v831_v15  ;;  %539 = vmatprep.mubr.f32.mxu0 %v2695_v0  ;;  %v790_v8 = vld [vmem:[#allocation8 + $0x58] sm:$0xff]  ;;  %v787_v9 = vld [vmem:[#allocation8 + $0x40] sm:$0xff]  ;;  %v789_v10 = vld [vmem:[#allocation8 + $0x50] sm:$0xff] }
  0xa4   : > { %700 = vmatprep.mubr.f32.mxu1 %v2695_v0  ;;  %1031 = vmatpush1.msra.mxu1 %v833_v16  ;;  %v3007_v11 = vld [vmem:[%s2894_s22 + $0x70] sm:$0xff]  ;;  %v786_v14 = vld [vmem:[#allocation8 + $0x38] sm:$0xff]  ;;  %v783_v15 = vld [vmem:[#allocation8 + $0x20] sm:$0xff] }
  0xa5   : > { %540 = vmatmul.mubr.f32.gmra.mxu0 %v2930_v17  ;;  %701 = vmatmul.mubr.f32.gmra.mxu1 %v2930_v17  ;;  %v784_v13 = vld [vmem:[#allocation8 + $0x28] sm:$0xff]  ;;  %v785_v16 = vld [vmem:[#allocation8 + $0x30] sm:$0xff] }
  0xa6   : > { %871 = vmatprep.subr.mxu0 %v828_v18  ;;  %1032 = vmatprep.subr.mxu1 %v830_v19  ;;  %v3014_v18 = vld [vmem:[%s2894_s22 + $0x78] sm:$0xff]  ;;  %v780_v19 = vld [vmem:[#allocation8 + $0x8] sm:$0xff]  ;;  %s2618_s22 = scalar_lea.vmem %s2617_s11, 4096 }
  0xa7   : > { %872 = vmatpush1.msra.mxu0 %v827_v20  ;;  %545 = vmatprep.mubr.f32.mxu0 %v2695_v0  ;;  %v782_v20 = vld [vmem:[#allocation8 + $0x18] sm:$0xff]  ;;  %p2620_p0 = scmp.lt.s32.totalorder %s2618_s22, %s2612_s1 }
  0xa8   : > { %706 = vmatprep.mubr.f32.mxu1 %v2695_v0  ;;  %1033 = vmatpush1.msra.mxu1 %v829_v21  ;;  %v779_v21 = vld [vmem:[#allocation8] sm:$0xff] }
  0xa9   : > { %546 = vmatmul.mubr.f32.gmra.mxu0 %v2937_v22  ;;  %707 = vmatmul.mubr.f32.gmra.mxu1 %v2937_v22  ;;  %p2621_p5 = por %p2620_p0, %p2619_p2 }
  0xaa   : > { %873 = vmatprep.subr.mxu0 %v824_v23  ;;  %1034 = vmatprep.subr.mxu1 %v826_v24  ;;  %v781_v23 = vld [vmem:[#allocation8 + $0x10] sm:$0xff] }
  0xab   : > { %874 = vmatpush1.msra.mxu0 %v823_v25  ;;  %551 = vmatprep.mubr.f32.mxu0 %v2695_v0  ;;  %v1585_v24 = vld [vmem:[#allocation10 + $0x70] sm:$0xff]  ;;  %p2622_p10 = pnand %p2621_p5, %p2615_p13 }
  0xac   : > { %712 = vmatprep.mubr.f32.mxu1 %v2695_v0  ;;  %1035 = vmatpush1.msra.mxu1 %v825_v26  ;;  %v1633_v25 = vld [vmem:[#allocation10 + $0x1f0] sm:$0xff] }
  0xad   : > { %552 = vmatmul.mubr.f32.gmra.mxu0 %v2944_v27  ;;  %713 = vmatmul.mubr.f32.gmra.mxu1 %v2944_v27  ;;  %v1617_v26 = vld [vmem:[#allocation10 + $0x170] sm:$0xff] }
  0xae   : > { %875 = vmatprep.subr.mxu0 %v820_v28  ;;  %1036 = vmatprep.subr.mxu1 %v822_v29  ;;  %v1584_v28 = vld [vmem:[#allocation10 + $0x68] sm:$0xff] }
  0xaf   : > { %876 = vmatpush1.msra.mxu0 %v819_v30  ;;  %557 = vmatprep.mubr.f32.mxu0 %v2695_v0  ;;  %v1632_v29 = vld [vmem:[#allocation10 + $0x1e8] sm:$0xff] }
  0xb0   : > { %718 = vmatprep.mubr.f32.mxu1 %v2695_v0  ;;  %1037 = vmatpush1.msra.mxu1 %v821_v31  ;;  %v1616_v30 = vld [vmem:[#allocation10 + $0x168] sm:$0xff]  ;;  %v1599_v31 = vld [vmem:[#allocation10 + $0xe0] sm:$0xff] }
  0xb1   : > { %558 = vmatmul.mubr.f32.gmra.mxu0 %v2951_v32  ;;  %719 = vmatmul.mubr.f32.gmra.mxu1 %v2951_v32 }
  0xb2   : > { %877 = vmatprep.subr.mxu0 %v816_v33  ;;  %1038 = vmatprep.subr.mxu1 %v818_v34  ;;  %v1631_v33 = vld [vmem:[#allocation10 + $0x1e0] sm:$0xff] }
  0xb3   : > { %878 = vmatpush1.msra.mxu0 %v815_v35  ;;  %563 = vmatprep.mubr.f32.mxu0 %v2695_v0  ;;  %v1615_v34 = vld [vmem:[#allocation10 + $0x160] sm:$0xff]  ;;  %v1598_v35 = vld [vmem:[#allocation10 + $0xd8] sm:$0xff] }
  0xb4   : > { %724 = vmatprep.mubr.f32.mxu1 %v2695_v0  ;;  %1039 = vmatpush1.msra.mxu1 %v817_v36  ;;  %v1582_v36 = vld [vmem:[#allocation10 + $0x58] sm:$0xff] }
  0xb5   : > { %564 = vmatmul.mubr.f32.gmra.mxu0 %v2958_v37  ;;  %725 = vmatmul.mubr.f32.gmra.mxu1 %v2958_v37 }
  0xb6   : > { %879 = vmatprep.subr.mxu0 %v812_v38  ;;  %1040 = vmatprep.subr.mxu1 %v814_v39  ;;  %v1614_v38 = vld [vmem:[#allocation10 + $0x158] sm:$0xff]  ;;  %v1597_v39 = vld [vmem:[#allocation10 + $0xd0] sm:$0xff] }
  0xb7   : > { %880 = vmatpush1.msra.mxu0 %v811_v40  ;;  %569 = vmatprep.mubr.f32.mxu0 %v2695_v0  ;;  %v1581_v40 = vld [vmem:[#allocation10 + $0x50] sm:$0xff] }
  0xb8   : > { %730 = vmatprep.mubr.f32.mxu1 %v2695_v0  ;;  %1041 = vmatpush1.msra.mxu1 %v813_v41  ;;  %v1629_v41 = vld [vmem:[#allocation10 + $0x1d0] sm:$0xff] }
  0xb9   : > { %570 = vmatmul.mubr.f32.gmra.mxu0 %v2965_v42  ;;  %731 = vmatmul.mubr.f32.gmra.mxu1 %v2965_v42 }
  0xba   : > { %881 = vmatprep.subr.mxu0 %v808_v43  ;;  %1042 = vmatprep.subr.mxu1 %v810_v44  ;;  %v1596_v43 = vld [vmem:[#allocation10 + $0xc8] sm:$0xff] }
  0xbb   : > { %882 = vmatpush1.msra.mxu0 %v807_v45  ;;  %575 = vmatprep.mubr.f32.mxu0 %v2695_v0  ;;  %v1580_v44 = vld [vmem:[#allocation10 + $0x48] sm:$0xff] }
  0xbc   : > { %736 = vmatprep.mubr.f32.mxu1 %v2695_v0  ;;  %1043 = vmatpush1.msra.mxu1 %v809_v46  ;;  %v1628_v45 = vld [vmem:[#allocation10 + $0x1c8] sm:$0xff] }
  0xbd   : > { %576 = vmatmul.mubr.f32.gmra.mxu0 %v2972_v47  ;;  %737 = vmatmul.mubr.f32.gmra.mxu1 %v2972_v47  ;;  %v1612_v46 = vld [vmem:[#allocation10 + $0x148] sm:$0xff] }
  0xbe   : > { %883 = vmatprep.subr.mxu0 %v804_v48  ;;  %1044 = vmatprep.subr.mxu1 %v806_v49  ;;  %v1579_v48 = vld [vmem:[#allocation10 + $0x40] sm:$0xff] }
  0xbf   : > { %884 = vmatpush1.msra.mxu0 %v803_v50  ;;  %581 = vmatprep.mubr.f32.mxu0 %v2695_v0  ;;  %v1627_v49 = vld [vmem:[#allocation10 + $0x1c0] sm:$0xff] }
  0xc0   : > { %742 = vmatprep.mubr.f32.mxu1 %v2695_v0  ;;  %1045 = vmatpush1.msra.mxu1 %v805_v51  ;;  %v1611_v50 = vld [vmem:[#allocation10 + $0x140] sm:$0xff]  ;;  %v1594_v51 = vld [vmem:[#allocation10 + $0xb8] sm:$0xff] }
  0xc1   : > { %582 = vmatmul.mubr.f32.gmra.mxu0 %v2979_v52  ;;  %743 = vmatmul.mubr.f32.gmra.mxu1 %v2979_v52 }
  0xc2   : > { %885 = vmatprep.subr.mxu0 %v800_v53  ;;  %1046 = vmatprep.subr.mxu1 %v802_v54  ;;  %v1626_v53 = vld [vmem:[#allocation10 + $0x1b8] sm:$0xff]  ;;  %v1593_v54 = vld [vmem:[#allocation10 + $0xb0] sm:$0xff] }
  0xc3   : > { %886 = vmatpush1.msra.mxu0 %v799_v55  ;;  %587 = vmatprep.mubr.f32.mxu0 %v2695_v0  ;;  %v1577_v55 = vld [vmem:[#allocation10 + $0x30] sm:$0xff] }
  0xc4   : > { %748 = vmatprep.mubr.f32.mxu1 %v2695_v0  ;;  %1047 = vmatpush1.msra.mxu1 %v801_v56  ;;  %v1625_v56 = vld [vmem:[#allocation10 + $0x1b0] sm:$0xff] }
  0xc5   : > { %588 = vmatmul.mubr.f32.gmra.mxu0 %v2986_v57  ;;  %749 = vmatmul.mubr.f32.gmra.mxu1 %v2986_v57 }
  0xc6   : > { %887 = vmatprep.subr.mxu0 %v796_v58  ;;  %1048 = vmatprep.subr.mxu1 %v798_v59  ;;  %v1592_v58 = vld [vmem:[#allocation10 + $0xa8] sm:$0xff] }
  0xc7   : > { %888 = vmatpush1.msra.mxu0 %v795_v60  ;;  %593 = vmatprep.mubr.f32.mxu0 %v2695_v0  ;;  %v1624_v59 = vld [vmem:[#allocation10 + $0x1a8] sm:$0xff] }
  0xc8   : > { %754 = vmatprep.mubr.f32.mxu1 %v2695_v0  ;;  %1049 = vmatpush1.msra.mxu1 %v797_v61  ;;  %v1576_v60 = vld [vmem:[#allocation10 + $0x28] sm:$0xff] }
  0xc9   : > { %594 = vmatmul.mubr.f32.gmra.mxu0 %v2993_v62  ;;  %755 = vmatmul.mubr.f32.gmra.mxu1 %v2993_v62  ;;  %v1608_v61 = vld [vmem:[#allocation10 + $0x128] sm:$0xff] }
  0xca   : > { %889 = vmatprep.subr.mxu0 %v792_v63  ;;  %1050 = vmatprep.subr.mxu1 %v794_v1  ;;  %v1623_v63 = vld [vmem:[#allocation10 + $0x1a0] sm:$0xff] }
  0xcb   : > { %890 = vmatpush1.msra.mxu0 %v791_v3  ;;  %599 = vmatprep.mubr.f32.mxu0 %v2695_v0  ;;  %v1575_v1 = vld [vmem:[#allocation10 + $0x20] sm:$0xff] }
  0xcc   : > { %760 = vmatprep.mubr.f32.mxu1 %v2695_v0  ;;  %1051 = vmatpush1.msra.mxu1 %v793_v4  ;;  %v1607_v3 = vld [vmem:[#allocation10 + $0x120] sm:$0xff]  ;;  %v1590_v4 = vld [vmem:[#allocation10 + $0x98] sm:$0xff] }
  0xcd   : > { %600 = vmatmul.mubr.f32.gmra.mxu0 %v3000_v5  ;;  %761 = vmatmul.mubr.f32.gmra.mxu1 %v3000_v5 }
  0xce   : > { %891 = vmatprep.subr.mxu0 %v788_v6  ;;  %1052 = vmatprep.subr.mxu1 %v790_v8  ;;  %v1622_v6 = vld [vmem:[#allocation10 + $0x198] sm:$0xff] }
  0xcf   : > { %892 = vmatpush1.msra.mxu0 %v787_v9  ;;  %605 = vmatprep.mubr.f32.mxu0 %v2695_v0  ;;  %v1606_v8 = vld [vmem:[#allocation10 + $0x118] sm:$0xff]  ;;  %v1589_v9 = vld [vmem:[#allocation10 + $0x90] sm:$0xff] }
  0xd0   : > { %766 = vmatprep.mubr.f32.mxu1 %v2695_v0  ;;  %1053 = vmatpush1.msra.mxu1 %v789_v10  ;;  %v1573_v10 = vld [vmem:[#allocation10 + $0x10] sm:$0xff] }
  0xd1   : > { %606 = vmatmul.mubr.f32.gmra.mxu0 %v3007_v11  ;;  %767 = vmatmul.mubr.f32.gmra.mxu1 %v3007_v11 }
  0xd2   : > { %893 = vmatprep.subr.mxu0 %v784_v13  ;;  %1054 = vmatprep.subr.mxu1 %v786_v14  ;;  %v1605_v13 = vld [vmem:[#allocation10 + $0x110] sm:$0xff]  ;;  %v1588_v14 = vld [vmem:[#allocation10 + $0x88] sm:$0xff] }
  0xd3   : > { %894 = vmatpush1.msra.mxu0 %v783_v15  ;;  %611 = vmatprep.mubr.f32.mxu0 %v2695_v0  ;;  %v1572_v15 = vld [vmem:[#allocation10 + $0x8] sm:$0xff] }
  0xd4   : > { %772 = vmatprep.mubr.f32.mxu1 %v2695_v0  ;;  %1055 = vmatpush1.msra.mxu1 %v785_v16  ;;  %v1620_v16 = vld [vmem:[#allocation10 + $0x188] sm:$0xff] }
  0xd5   : > { %612 = vmatmul.mubr.f32.gmra.mxu0 %v3014_v18  ;;  %773 = vmatmul.mubr.f32.gmra.mxu1 %v3014_v18 }
  0xd6   : > { %895 = vmatprep.subr.mxu0 %v780_v19  ;;  %1056 = vmatprep.subr.mxu1 %v782_v20  ;;  %v1587_v19 = vld [vmem:[#allocation10 + $0x80] sm:$0xff] }
  0xd7   : > { %896 = vmatpush1.msra.mxu0 %v779_v21  ;;  %929 = vmatprep.mubr.f32.mxu0 %v2695_v0  ;;  %v1571_v20 = vld [vmem:[#allocation10] sm:$0xff] }
  0xd8   : > { %1057 = vmatpush1.msra.mxu1 %v781_v23  ;;  %1090 = vmatprep.mubr.f32.mxu1 %v2695_v0  ;;  %v1619_v21 = vld [vmem:[#allocation10 + $0x180] sm:$0xff] }
  0xd9   : > { %930 = vmatmul.mubr.f32.vlgmr.msra.gmra.mxu0 %v2911_v2  ;;  %1091 = vmatmul.mubr.f32.vlgmr.msra.gmra.mxu1 %v2911_v2  ;;  %v1602_v2 = vld [vmem:[#allocation10 + $0xf8] sm:$0xff]  ;;  %v1603_v23 = vld [vmem:[#allocation10 + $0x100] sm:$0xff] }
  0xda   : > { %935 = vmatprep.mubr.f32.mxu0 %v2695_v0  ;;  %1096 = vmatprep.mubr.f32.mxu1 %v2695_v0 }
  0xdb   : > { %2098 = vmatprep.subr.mxu0 %v1602_v2 }
  0xdd   : > { %936 = vmatmul.mubr.f32.gmra.mxu0 %v2916_v7  ;;  %1097 = vmatmul.mubr.f32.gmra.mxu1 %v2916_v7  ;;  %v1586_v7 = vld [vmem:[#allocation10 + $0x78] sm:$0xff] }
  0xde   : > { %941 = vmatprep.mubr.f32.mxu0 %v2695_v0  ;;  %1102 = vmatprep.mubr.f32.mxu1 %v2695_v0 }
  0xdf   : > { %2099 = vmatpush3.msra.mxu0 %v1586_v7 }
  0xe1   : > { %942 = vmatmul.mubr.f32.gmra.mxu0 %v2923_v12  ;;  %1103 = vmatmul.mubr.f32.gmra.mxu1 %v2923_v12  ;;  %v1634_v12 = vld [vmem:[#allocation10 + $0x1f8] sm:$0xff] }
  0xe2   : > { %947 = vmatprep.mubr.f32.mxu0 %v2695_v0  ;;  %1108 = vmatprep.mubr.f32.mxu1 %v2695_v0 }
  0xe3   : > { %2178 = vmatprep.subr.mxu1 %v1634_v12 }
  0xe5   : > { %948 = vmatmul.mubr.f32.gmra.mxu0 %v2930_v17  ;;  %1109 = vmatmul.mubr.f32.gmra.mxu1 %v2930_v17  ;;  %v1618_v17 = vld [vmem:[#allocation10 + $0x178] sm:$0xff] }
  0xe6   : > { %953 = vmatprep.mubr.f32.mxu0 %v2695_v0  ;;  %1114 = vmatprep.mubr.f32.mxu1 %v2695_v0 }
  0xe7   : > { %2179 = vmatpush3.msra.mxu1 %v1618_v17 }
  0xe8   : > { %2180 = vmatprep.subr.mxu1 %v1633_v25 }
  0xe9   : > { %954 = vmatmul.mubr.f32.gmra.mxu0 %v2937_v22  ;;  %1115 = vmatmul.mubr.f32.gmra.mxu1 %v2937_v22  ;;  %v1601_v22 = vld [vmem:[#allocation10 + $0xf0] sm:$0xff] }
  0xea   : > { %959 = vmatprep.mubr.f32.mxu0 %v2695_v0  ;;  %1120 = vmatprep.mubr.f32.mxu1 %v2695_v0 }
  0xeb   : > { %2100 = vmatprep.subr.mxu0 %v1601_v22  ;;  %2181 = vmatpush3.msra.mxu1 %v1617_v26 }
  0xec   : > { %2101 = vmatpush3.msra.mxu0 %v1585_v24  ;;  %2182 = vmatprep.subr.mxu1 %v1632_v29 }
  0xed   : > { %960 = vmatmul.mubr.f32.gmra.mxu0 %v2944_v27  ;;  %1121 = vmatmul.mubr.f32.gmra.mxu1 %v2944_v27  ;;  %v1600_v27 = vld [vmem:[#allocation10 + $0xe8] sm:$0xff] }
  0xee   : > { %965 = vmatprep.mubr.f32.mxu0 %v2695_v0  ;;  %1126 = vmatprep.mubr.f32.mxu1 %v2695_v0 }
  0xef   : > { %2102 = vmatprep.subr.mxu0 %v1600_v27  ;;  %2183 = vmatpush3.msra.mxu1 %v1616_v30 }
  0xf0   : > { %2103 = vmatpush3.msra.mxu0 %v1584_v28  ;;  %2184 = vmatprep.subr.mxu1 %v1631_v33 }
  0xf1   : > { %966 = vmatmul.mubr.f32.gmra.mxu0 %v2951_v32  ;;  %1127 = vmatmul.mubr.f32.gmra.mxu1 %v2951_v32  ;;  %v1583_v32 = vld [vmem:[#allocation10 + $0x60] sm:$0xff] }
  0xf2   : > { %971 = vmatprep.mubr.f32.mxu0 %v2695_v0  ;;  %1132 = vmatprep.mubr.f32.mxu1 %v2695_v0 }
  0xf3   : > { %2104 = vmatprep.subr.mxu0 %v1599_v31  ;;  %2185 = vmatpush3.msra.mxu1 %v1615_v34 }
  0xf4   : > { %2105 = vmatpush3.msra.mxu0 %v1583_v32 }
  0xf5   : > { %972 = vmatmul.mubr.f32.gmra.mxu0 %v2958_v37  ;;  %1133 = vmatmul.mubr.f32.gmra.mxu1 %v2958_v37  ;;  %v1630_v37 = vld [vmem:[#allocation10 + $0x1d8] sm:$0xff] }
  0xf6   : > { %977 = vmatprep.mubr.f32.mxu0 %v2695_v0  ;;  %1138 = vmatprep.mubr.f32.mxu1 %v2695_v0 }
  0xf7   : > { %2106 = vmatprep.subr.mxu0 %v1598_v35  ;;  %2186 = vmatprep.subr.mxu1 %v1630_v37 }
  0xf8   : > { %2107 = vmatpush3.msra.mxu0 %v1582_v36  ;;  %2187 = vmatpush3.msra.mxu1 %v1614_v38 }
  0xf9   : > { %978 = vmatmul.mubr.f32.gmra.mxu0 %v2965_v42  ;;  %1139 = vmatmul.mubr.f32.gmra.mxu1 %v2965_v42  ;;  %v1613_v42 = vld [vmem:[#allocation10 + $0x150] sm:$0xff] }
  0xfa   : > { %983 = vmatprep.mubr.f32.mxu0 %v2695_v0  ;;  %1144 = vmatprep.mubr.f32.mxu1 %v2695_v0 }
  0xfb   : > { %2108 = vmatprep.subr.mxu0 %v1597_v39  ;;  %2188 = vmatprep.subr.mxu1 %v1629_v41 }
  0xfc   : > { %2109 = vmatpush3.msra.mxu0 %v1581_v40  ;;  %2189 = vmatpush3.msra.mxu1 %v1613_v42 }
  0xfd   : > { %984 = vmatmul.mubr.f32.gmra.mxu0 %v2972_v47  ;;  %1145 = vmatmul.mubr.f32.gmra.mxu1 %v2972_v47  ;;  %v1595_v47 = vld [vmem:[#allocation10 + $0xc0] sm:$0xff] }
  0xfe   : > { %989 = vmatprep.mubr.f32.mxu0 %v2695_v0  ;;  %1150 = vmatprep.mubr.f32.mxu1 %v2695_v0 }
  0xff   : > { %2110 = vmatprep.subr.mxu0 %v1596_v43  ;;  %2190 = vmatprep.subr.mxu1 %v1628_v45  ;;  %v437_v43 = vlaneseq }
 0x100   : > { %2111 = vmatpush3.msra.mxu0 %v1580_v44  ;;  %2191 = vmatpush3.msra.mxu1 %v1612_v46 }
 0x101   : > { %990 = vmatmul.mubr.f32.gmra.mxu0 %v2979_v52  ;;  %1151 = vmatmul.mubr.f32.gmra.mxu1 %v2979_v52  ;;  %v1578_v52 = vld [vmem:[#allocation10 + $0x38] sm:$0xff] }
 0x102   : > { %995 = vmatprep.mubr.f32.mxu0 %v2695_v0  ;;  %1156 = vmatprep.mubr.f32.mxu1 %v2695_v0 }
 0x103   : > { %2112 = vmatprep.subr.mxu0 %v1595_v47  ;;  %2192 = vmatprep.subr.mxu1 %v1627_v49 }
 0x104   : > { %2113 = vmatpush3.msra.mxu0 %v1579_v48  ;;  %2193 = vmatpush3.msra.mxu1 %v1611_v50  ;;  %v3140_v48 = vshrl.u32 %v437_v43, 7 }
 0x105   : > { %996 = vmatmul.mubr.f32.gmra.mxu0 %v2986_v57  ;;  %1157 = vmatmul.mubr.f32.gmra.mxu1 %v2986_v57  ;;  %v1609_v57 = vld [vmem:[#allocation10 + $0x130] sm:$0xff] }
 0x106   : > { %1001 = vmatprep.mubr.f32.mxu0 %v2695_v0  ;;  %1162 = vmatprep.mubr.f32.mxu1 %v2695_v0 }
 0x107   : > { %2114 = vmatprep.subr.mxu0 %v1594_v51  ;;  %2194 = vmatprep.subr.mxu1 %v1626_v53  ;;  %v4123_v53 = vsub.s32 0, %v3140_v48 }
 0x108   : > { %2115 = vmatpush3.msra.mxu0 %v1578_v52 }
 0x109   : > { %1002 = vmatmul.mubr.f32.gmra.mxu0 %v2993_v62  ;;  %1163 = vmatmul.mubr.f32.gmra.mxu1 %v2993_v62  ;;  %v1591_v62 = vld [vmem:[#allocation10 + $0xa0] sm:$0xff] }
 0x10a   : > { %1007 = vmatprep.mubr.f32.mxu0 %v2695_v0  ;;  %1168 = vmatprep.mubr.f32.mxu1 %v2695_v0 }
 0x10b   : > { %2116 = vmatprep.subr.mxu0 %v1593_v54  ;;  %v435_v54 = vld [vmem:[#allocation7] sm:$0xf] }
 0x10c   : > { %2117 = vmatpush3.msra.mxu0 %v1577_v55 }
 0x10d   : > { %1008 = vmatmul.mubr.f32.gmra.mxu0 %v3000_v5  ;;  %1169 = vmatmul.mubr.f32.gmra.mxu1 %v3000_v5  ;;  %v1574_v5 = vld [vmem:[#allocation10 + $0x18] sm:$0xff] }
 0x10e   : > { %1013 = vmatprep.mubr.f32.mxu0 %v2695_v0  ;;  %1174 = vmatprep.mubr.f32.mxu1 %v2695_v0 }
 0x10f   : > { %2118 = vmatprep.subr.mxu0 %v1592_v58 }
 0x110   : > { %2119 = vmatpush3.msra.mxu0 %v1576_v60  ;;  %v3163_v60 = vrot.slane %v435_v54, %v4123_v53 }
 0x111   : > { %1014 = vmatmul.mubr.f32.gmra.mxu0 %v3007_v11  ;;  %1175 = vmatmul.mubr.f32.gmra.mxu1 %v3007_v11  ;;  %v1621_v11 = vld [vmem:[#allocation10 + $0x190] sm:$0xff] }
 0x112   : > { %1019 = vmatprep.mubr.f32.mxu0 %v2695_v0  ;;  %1180 = vmatprep.mubr.f32.mxu1 %v2695_v0  ;;  %v1610_v0 = vld [vmem:[#allocation10 + $0x138] sm:$0xff] }
 0x113   : > { %2195 = vmatpush3.msra.mxu1 %v1610_v0  ;;  %2120 = vmatprep.subr.mxu0 %v1591_v62  ;;  %v4122_v0 = vsub.s32 2, %v3140_v48 }
 0x114   : > { %2196 = vmatprep.subr.mxu1 %v1625_v56  ;;  %2121 = vmatpush3.msra.mxu0 %v1575_v1  ;;  %v443_v1 = vsub.s32 1, %v3140_v48 }
 0x115   : > { %1020 = vmatmul.mubr.f32.gmra.mxu0 %v3014_v18  ;;  %1181 = vmatmul.mubr.f32.gmra.mxu1 %v3014_v18  ;;  %v1604_v18 = vld [vmem:[#allocation10 + $0x108] sm:$0xff] }
 0x116   : > { %2197 = vmatpush3.msra.mxu1 %v1609_v57  ;;  %2122 = vmatprep.subr.mxu0 %v1590_v4  ;;  %v4121_v57 = vsub.s32 3, %v3140_v48 }
 0x117   : > { %2198 = vmatprep.subr.mxu1 %v1624_v59  ;;  %2123 = vmatpush3.msra.mxu0 %v1574_v5 }
 0x118   : > { %2199 = vmatpush3.msra.mxu1 %v1608_v61  ;;  %2124 = vmatprep.subr.mxu0 %v1589_v9  ;;  %v3167_v61 = vrot.slane %v435_v54, %v4122_v0 }
 0x119   : > { %2200 = vmatprep.subr.mxu1 %v1623_v63  ;;  %2125 = vmatpush3.msra.mxu0 %v1573_v10 }
 0x11a   : > { %2201 = vmatpush3.msra.mxu1 %v1607_v3  ;;  %2126 = vmatprep.subr.mxu0 %v1588_v14  ;;  %v3172_v3 = vrot.slane %v435_v54, %v4121_v57 }
 0x11b   : > { %2202 = vmatprep.subr.mxu1 %v1622_v6  ;;  %2127 = vmatpush3.msra.mxu0 %v1572_v15 }
 0x11c   : > { %2203 = vmatpush3.msra.mxu1 %v1606_v8  ;;  %2128 = vmatprep.subr.mxu0 %v1587_v19 }
 0x11d   : > { %2204 = vmatprep.subr.mxu1 %v1621_v11  ;;  %2129 = vmatpush3.msra.mxu0 %v1571_v20 }
 0x11e   : > { %2205 = vmatpush3.msra.mxu1 %v1605_v13  ;;  %v3185_v13 = vrot.slane %v435_v54, %v443_v1 }
 0x11f   : > { %2206 = vmatprep.subr.mxu1 %v1620_v16 }
 0x120   : > { %2207 = vmatpush3.msra.mxu1 %v1604_v18 }
 0x121   : > { %2208 = vmatprep.subr.mxu1 %v1619_v21 }
 0x122   : > { %2209 = vmatpush3.msra.mxu1 %v1603_v23 }
 0x159   : > { %v3084_v2 = vpop.f32.mrf.mxu0  ;;  %v3086_v7 = vpop.f32.mrf.mxu1 }
 0x15b   : > { %v3088_v12 = vpop.f32.mrf.mxu0  ;;  %v3090_v17 = vpop.f32.mrf.mxu1 }
 0x15d   : > { %v3092_v22 = vpop.f32.mrf.mxu0  ;;  %v3094_v24 = vpop.f32.mrf.mxu1 }
 0x15f   : > { %v3096_v25 = vpop.f32.mrf.mxu0  ;;  %v3098_v26 = vpop.f32.mrf.mxu1 }
 0x161   : > { %v3100_v27 = vpop.f32.mrf.mxu0  ;;  %v3102_v28 = vpop.f32.mrf.mxu1 }
 0x163   : > { %v3104_v29 = vpop.f32.mrf.mxu0  ;;  %v3106_v30 = vpop.f32.mrf.mxu1 }
 0x165   : > { %v3108_v31 = vpop.f32.mrf.mxu0  ;;  %v3110_v32 = vpop.f32.mrf.mxu1 }
 0x167   : > { %v3112_v33 = vpop.f32.mrf.mxu0  ;;  %v3114_v34 = vpop.f32.mrf.mxu1 }
 0x169   : > { %v3116_v35 = vpop.f32.mrf.mxu0  ;;  %v3118_v36 = vpop.f32.mrf.mxu1 }
 0x16b   : > { %v3120_v37 = vpop.f32.mrf.mxu0  ;;  %v3122_v38 = vpop.f32.mrf.mxu1 }
 0x16d   : > { %v3124_v39 = vpop.f32.mrf.mxu0  ;;  %v3126_v40 = vpop.f32.mrf.mxu1 }
 0x16f   : > { %v3128_v41 = vpop.f32.mrf.mxu0  ;;  %v3130_v42 = vpop.f32.mrf.mxu1 }
 0x171   : > { %v3132_v44 = vpop.f32.mrf.mxu0  ;;  %v3134_v45 = vpop.f32.mrf.mxu1 }
 0x173   : > { %v3136_v46 = vpop.f32.mrf.mxu0  ;;  %v3138_v47 = vpop.f32.mrf.mxu1 }
 0x175   : > { %v3142_v49 = vpop.f32.mrf.mxu0  ;;  %v3144_v50 = vpop.f32.mrf.mxu1 }
 0x177   : > { %v3146_v51 = vpop.f32.mrf.mxu0  ;;  %v3148_v52 = vpop.f32.mrf.mxu1 }
 0x179   : > { %v3152_v55 = vpop.f32.mrf.mxu0  ;;  %v3154_v56 = vpop.f32.mrf.mxu1 }
 0x17b   : > { %v3157_v58 = vpop.f32.mrf.mxu0  ;;  %v3159_v59 = vpop.f32.mrf.mxu1 }
 0x17d   : > { %v577_v62 = vpop.f32.mrf.mxu0  ;;  %v738_v63 = vpop.f32.mrf.mxu1 }
 0x17e   : > { %v3175_v4 = vadd.f32 %v577_v62, %v3163_v60  ;;  %v3178_v5 = vadd.f32 %v738_v63, %v3167_v61 }
 0x17f   : > { %v3180_v6 = vpop.f32.mrf.mxu0  ;;  %v740_v8 = vpop.f32.mrf.mxu1 }
 0x180   : > { %4141 = vst [vmem:[#allocation16_spill] sm:$0xff] %v3175_v4  ;;  %4142 = vst [vmem:[#allocation17_spill] sm:$0xff] %v3178_v5  ;;  %v3183_v9 = vadd.f32 %v740_v8, %v3172_v3  ;;  %v3366_v4 = vadd.f32 %v3116_v35, %v3163_v60 }
 0x181   : > { %v583_v10 = vpop.f32.mrf.mxu0  ;;  %v744_v11 = vpop.f32.mrf.mxu1 }
 0x182   : > { %4143 = vst [vmem:[#allocation18_spill] sm:$0xff] %v3183_v9  ;;  %v3188_v14 = vadd.f32 %v583_v10, %v3163_v60  ;;  %v3191_v15 = vadd.f32 %v744_v11, %v3167_v61  ;;  %4177 = vst [vmem:[#allocation49_spill] sm:$0xff] %v3366_v4 }
 0x183   : > { %v585_v16 = vpop.f32.mrf.mxu0  ;;  %v746_v18 = vpop.f32.mrf.mxu1 }
 0x184   : > { %4144 = vst [vmem:[#allocation19_spill] sm:$0xff] %v3188_v14  ;;  %4145 = vst [vmem:[#allocation20_spill] sm:$0xff] %v3191_v15  ;;  %v3194_v19 = vadd.f32 %v585_v16, %v3185_v13  ;;  %v3197_v20 = vadd.f32 %v746_v18, %v3172_v3  ;;  %v3328_v14 = vadd.f32 %v3102_v28, %v3167_v61 }
 0x185   : > { %v589_v21 = vpop.f32.mrf.mxu0  ;;  %v750_v23 = vpop.f32.mrf.mxu1  ;;  %v3347_v28 = vadd.f32 %v3110_v32, %v3167_v61 }
 0x186   : > { %4146 = vst [vmem:[#allocation21_spill] sm:$0xff] %v3194_v19  ;;  %4147 = vst [vmem:[#allocation22_spill] sm:$0xff] %v3197_v20  ;;  %v3200_v43 = vadd.f32 %v589_v21, %v3163_v60  ;;  %v3203_v54 = vadd.f32 %v750_v23, %v3167_v61 }
 0x187   : > { %v591_v62 = vpop.f32.mrf.mxu0  ;;  %v752_v63 = vpop.f32.mrf.mxu1  ;;  %4172 = vst [vmem:[#allocation44_spill] sm:$0xff] %v3328_v14  ;;  %4174 = vst [vmem:[#allocation46_spill] sm:$0xff] %v3347_v28 }
 0x188   : > { %4148 = vst [vmem:[#allocation23_spill] sm:$0xff] %v3200_v43  ;;  %4149 = vst [vmem:[#allocation24_spill] sm:$0xff] %v3203_v54  ;;  %v3206_v8 = vadd.f32 %v591_v62, %v3185_v13  ;;  %v3209_v10 = vadd.f32 %v752_v63, %v3172_v3 }
 0x189   : > { %v595_v11 = vpop.f32.mrf.mxu0  ;;  %v756_v16 = vpop.f32.mrf.mxu1 }
 0x18a   : > { %4150 = vst [vmem:[#allocation25_spill] sm:$0xff] %v3206_v8  ;;  %4151 = vst [vmem:[#allocation26_spill] sm:$0xff] %v3209_v10  ;;  %v3212_v18 = vadd.f32 %v595_v11, %v3163_v60  ;;  %v3215_v57 = vadd.f32 %v756_v16, %v3167_v61 }
 0x18b   : > { %v597_v21 = vpop.f32.mrf.mxu0  ;;  %v758_v0 = vpop.f32.mrf.mxu1 }
 0x18c   : > { %4152 = vst [vmem:[#allocation27_spill] sm:$0xff] %v3212_v18  ;;  %4153 = vst [vmem:[#allocation28_spill] sm:$0xff] %v3215_v57  ;;  %v3218_v23 = vadd.f32 %v597_v21, %v3185_v13  ;;  %v3221_v53 = vadd.f32 %v758_v0, %v3172_v3 }
 0x18d   : > { %v601_v62 = vpop.f32.mrf.mxu0  ;;  %v762_v54 = vpop.f32.mrf.mxu1 }
 0x18e   : > { %4154 = vst [vmem:[#allocation29_spill] sm:$0xff] %v3218_v23  ;;  %4155 = vst [vmem:[#allocation30_spill] sm:$0xff] %v3221_v53  ;;  %v3224_v63 = vadd.f32 %v601_v62, %v3163_v60  ;;  %v3227_v43 = vadd.f32 %v762_v54, %v3167_v61  ;;  %v843_v54 = vld [vmem:[%s4111_s4] sm:$0xf] }
 0x18f   : > { %v603_v11 = vpop.f32.mrf.mxu0  ;;  %v764_v18 = vpop.f32.mrf.mxu1 }
 0x190   : > { %4156 = vst [vmem:[#allocation31_spill] sm:$0xff] %v3224_v63  ;;  %4157 = vst [vmem:[#allocation32_spill] sm:$0xff] %v3227_v43  ;;  %v3230_v16 = vadd.f32 %v603_v11, %v3185_v13  ;;  %v3233_v57 = vadd.f32 %v764_v18, %v3172_v3 }
 0x191   : > { %v607_v21 = vpop.f32.mrf.mxu0  ;;  %v768_v23 = vpop.f32.mrf.mxu1 }
 0x192   : > { %4158 = vst [vmem:[#allocation33_spill] sm:$0xff] %v3230_v16  ;;  %4159 = vst [vmem:[#allocation34_spill] sm:$0xff] %v3233_v57  ;;  %v3236_v0 = vadd.f32 %v607_v21, %v3163_v60  ;;  %v3239_v53 = vadd.f32 %v768_v23, %v3167_v61  ;;  %v4167_v16 = vsub.s32 2, %v3140_v48 }
 0x193   : > { %v609_v62 = vpop.f32.mrf.mxu0  ;;  %v770_v63 = vpop.f32.mrf.mxu1 }
 0x194   : > { %4160 = vst [vmem:[#allocation35_spill] sm:$0xff] %v3236_v0  ;;  %4161 = vst [vmem:[#allocation36_spill] sm:$0xff] %v3239_v53  ;;  %v3245_v11 = vadd.f32 %v609_v62, %v3185_v13  ;;  %v3248_v18 = vadd.f32 %v770_v63, %v3172_v3  ;;  %v4166_v53 = vsub.s32 0, %v3140_v48  ;;  %v3262_v15 = vrot.slane %v843_v54, %v4167_v16 }
 0x195   : > { %v613_v43 = vpop.f32.mrf.mxu0  ;;  %v774_v57 = vpop.f32.mrf.mxu1  ;;  %v4170_v16 = vsub.s32 3, %v3140_v48  ;;  %v3300_v48 = vadd.f32 %v3092_v22, %v3163_v60  ;;  %v3320_v22 = vadd.f32 %v3100_v27, %v3163_v60 }
 0x196   : > { %4162 = vst [vmem:[#allocation37_spill] sm:$0xff] %v3245_v11  ;;  %4163 = vst [vmem:[#allocation38_spill] sm:$0xff] %v3248_v18  ;;  %v3251_v21 = vadd.f32 %v613_v43, %v3163_v60  ;;  %v3254_v23 = vadd.f32 %v774_v57, %v3167_v61  ;;  %v3258_v0 = vrot.slane %v843_v54, %v4166_v53 }
 0x197   : > { %v615_v62 = vpop.f32.mrf.mxu0  ;;  %v776_v11 = vpop.f32.mrf.mxu1  ;;  %v3270_v57 = vrot.slane %v843_v54, %v443_v1  ;;  %v3280_v10 = vrot.slane %v843_v54, %v4170_v16  ;;  %v3288_v1 = vadd.f32 %v3086_v7, %v3167_v61  ;;  %v3308_v7 = vadd.f32 %v3096_v25, %v3185_v13  ;;  %4171 = vst [vmem:[#allocation43_spill] sm:$0xff] %v3320_v22 }
 0x198   : > { %4164 = vst [vmem:[#allocation39_spill] sm:$0xff] %v3251_v21  ;;  %4165 = vst [vmem:[#allocation40_spill] sm:$0xff] %v3254_v23  ;;  %v3265_v63 = vadd.f32 %v615_v62, %v3185_v13  ;;  %v3268_v18 = vadd.f32 %v776_v11, %v3172_v3  ;;  %v3284_v62 = vadd.f32 %v3084_v2, %v3163_v60 }
 0x199   : > { %v931_v43 = vpop.f32.mrf.mxu0  ;;  %v1092_v21 = vpop.f32.mrf.mxu1  ;;  %v3304_v2 = vadd.f32 %v3094_v24, %v3167_v61 }
 0x19a   : > { %4168 = vst [vmem:[#allocation41_spill] sm:$0xff] %v3265_v63  ;;  %4169 = vst [vmem:[#allocation42_spill] sm:$0xff] %v3268_v18  ;;  %v3273_v23 = vadd.f32 %v931_v43, %v3258_v0  ;;  %v3276_v53 = vadd.f32 %v1092_v21, %v3262_v15  ;;  %v3292_v43 = vadd.f32 %v3088_v12, %v3185_v13 }
 0x19b   : > { %v933_v11 = vpop.f32.mrf.mxu0  ;;  %v1094_v18 = vpop.f32.mrf.mxu1  ;;  %v3296_v21 = vadd.f32 %v3090_v17, %v3172_v3  ;;  %v3316_v63 = vadd.f32 %v3098_v26, %v3172_v3  ;;  %v3336_v26 = vadd.f32 %v3106_v30, %v3172_v3 }
 0x19c   : > { %v1251_v54 = vmul.f32 0.70710677, %v3273_v23  ;;  %v3312_v12 = vadd.f32 %v933_v11, %v3270_v57  ;;  %v1253_v24 = vmul.f32 0.70710677, %v3276_v53  ;;  %v3324_v25 = vadd.f32 %v1094_v18, %v3280_v10 }
 0x19d   : > { %v937_v16 = vpop.f32.mrf.mxu0  ;;  %v1098_v17 = vpop.f32.mrf.mxu1  ;;  %v3332_v11 = vadd.f32 %v3104_v29, %v3185_v13  ;;  %v3343_v18 = vadd.f32 %v3108_v31, %v3163_v60  ;;  %v3351_v29 = vadd.f32 %v3112_v33, %v3185_v13  ;;  %v3370_v33 = vadd.f32 %v3118_v36, %v3167_v61 }
 0x19e   : > { %v3339_v27 = vadd.f32 %v937_v16, %v3258_v0  ;;  %v3354_v30 = vadd.f32 %v1098_v17, %v3262_v15  ;;  %v3358_v16 = vadd.f32 %v3114_v34, %v3172_v3  ;;  %2352 = verf.f32 %v1251_v54 }
 0x19f   : > { %v939_v8 = vpop.f32.mrf.mxu0  ;;  %v1100_v20 = vpop.f32.mrf.mxu1  ;;  %4173 = vst [vmem:[#allocation45_spill] sm:$0xff] %v3343_v18  ;;  %4175 = vst [vmem:[#allocation47_spill] sm:$0xff] %v3351_v29  ;;  %v1252_v19 = vmul.f32 0.70710677, %v3312_v12  ;;  %2354 = verf.f32 %v1253_v24  ;;  %v1254_v34 = vmul.f32 0.70710677, %v3324_v25  ;;  %v3375_v54 = vadd.f32 %v3120_v37, %v3185_v13 }
 0x1a0   : > { %4176 = vst [vmem:[#allocation48_spill] sm:$0xff] %v3358_v16  ;;  %v3362_v31 = vadd.f32 %v939_v8, %v3270_v57  ;;  %4178 = vst [vmem:[#allocation50_spill] sm:$0xff] %v3370_v33  ;;  %v3379_v8 = vadd.f32 %v3122_v38, %v3172_v3  ;;  %v1255_v17 = vmul.f32 0.70710677, %v3339_v27  ;;  %v3383_v35 = vadd.f32 %v1100_v20, %v3280_v10 }
 0x1a1   : > { %v943_v5 = vpop.f32.mrf.mxu0  ;;  %v1104_v32 = vpop.f32.mrf.mxu1  ;;  %4179 = vst [vmem:[#allocation51_spill] sm:$0xff] %v3375_v54  ;;  %v3387_v36 = vadd.f32 %v3124_v39, %v3163_v60  ;;  %v3391_v24 = vadd.f32 %v3126_v40, %v3167_v61  ;;  %v1257_v37 = vmul.f32 0.70710677, %v3354_v30  ;;  %v3399_v33 = vadd.f32 %v3128_v41, %v3185_v13 }
 0x1a2   : > { %4180 = vst [vmem:[#allocation52_spill] sm:$0xff] %v3379_v8  ;;  %v3395_v38 = vadd.f32 %v943_v5, %v3258_v0  ;;  %2356 = verf.f32 %v1252_v19  ;;  %v1256_v20 = vmul.f32 0.70710677, %v3362_v31  ;;  %v3403_v8 = vadd.f32 %v1104_v32, %v3262_v15 }
 0x1a3   : > { %v945_v9 = vpop.f32.mrf.mxu0  ;;  %v1106_v4 = vpop.f32.mrf.mxu1  ;;  %4181 = vst [vmem:[#allocation53_spill] sm:$0xff] %v3387_v36  ;;  %4182 = vst [vmem:[#allocation54_spill] sm:$0xff] %v3391_v24  ;;  %v3407_v40 = vadd.f32 %v3130_v42, %v3172_v3  ;;  %v3411_v5 = vadd.f32 %v3132_v44, %v3163_v60  ;;  %2358 = verf.f32 %v1254_v34  ;;  %v3418_v19 = vadd.f32 %v3134_v45, %v3167_v61 }
 0x1a4   : > { %4183 = vst [vmem:[#allocation55_spill] sm:$0xff] %v3399_v33  ;;  %v3414_v41 = vadd.f32 %v945_v9, %v3270_v57  ;;  %2360 = verf.f32 %v1255_v17  ;;  %v1258_v32 = vmul.f32 0.70710677, %v3383_v35  ;;  %v1107_v24 = vadd.f32 %v1106_v4, %v3280_v10 }
 0x1a5   : > { %v949_v39 = vpop.f32.mrf.mxu0  ;;  %v1110_v36 = vpop.f32.mrf.mxu1  ;;  %4184 = vst [vmem:[#allocation56_spill] sm:$0xff] %v3407_v40  ;;  %4185 = vst [vmem:[#allocation57_spill] sm:$0xff] %v3411_v5  ;;  %v3424_v40 = vadd.f32 %v3136_v46, %v3185_v13  ;;  %2362 = verf.f32 %v1257_v37  ;;  %v1259_v44 = vmul.f32 0.70710677, %v3395_v38  ;;  %v3430_v45 = vadd.f32 %v3138_v47, %v3172_v3 }
 0x1a6   : > { %4186 = vst [vmem:[#allocation58_spill] sm:$0xff] %v3418_v19  ;;  %v950_v9 = vadd.f32 %v949_v39, %v3258_v0  ;;  %v3434_v34 = vadd.f32 %v3142_v49, %v3163_v60  ;;  %2364 = verf.f32 %v1256_v20  ;;  %v1261_v4 = vmul.f32 0.70710677, %v3403_v8 }
 0x1a7   : > { %v951_v33 = vpop.f32.mrf.mxu0  ;;  %v1112_v42 = vpop.f32.mrf.mxu1  ;;  %4187 = vst [vmem:[#allocation59_spill] sm:$0xff] %v3424_v40  ;;  %4188 = vst [vmem:[#allocation60_spill] sm:$0xff] %v3430_v45  ;;  %v3439_v46 = vadd.f32 %v3144_v50, %v3167_v61  ;;  %v3443_v37 = vadd.f32 %v3146_v51, %v3185_v13  ;;  %v3447_v47 = vadd.f32 %v3148_v52, %v3172_v3  ;;  %v1260_v49 = vmul.f32 0.70710677, %v3414_v41 }
 0x1a8   : > { %4189 = vst [vmem:[#allocation61_spill] sm:$0xff] %v3434_v34  ;;  %v3452_v20 = vadd.f32 %v3152_v55, %v3163_v60  ;;  %v3456_v39 = vadd.f32 %v3154_v56, %v3167_v61  ;;  %2366 = verf.f32 %v1258_v32  ;;  %v1262_v50 = vmul.f32 0.70710677, %v1107_v24 }
 0x1a9   : > { %v955_v17 = vpop.f32.mrf.mxu0  ;;  %v1116_v19 = vpop.f32.mrf.mxu1  ;;  %4190 = vst [vmem:[#allocation62_spill] sm:$0xff] %v3439_v46  ;;  %4191 = vst [vmem:[#allocation63_spill] sm:$0xff] %v3443_v37  ;;  %v3460_v51 = vadd.f32 %v3157_v58, %v3185_v13  ;;  %2368 = verf.f32 %v1259_v44  ;;  %v1263_v52 = vmul.f32 0.70710677, %v950_v9  ;;  %v3465_v55 = vadd.f32 %v3159_v59, %v3172_v3 }
 0x1aa   : > { %4192 = vst [vmem:[#allocation64_spill] sm:$0xff] %v3447_v47  ;;  %4193 = vst [vmem:[#allocation65_spill] sm:$0xff] %v3452_v20  ;;  %v1111_v47 = vadd.f32 %v1110_v36, %v3262_v15  ;;  %v3469_v56 = vadd.f32 %v3180_v6, %v3185_v13  ;;  %2370 = verf.f32 %v1261_v4  ;;  %v952_v60 = vadd.f32 %v951_v33, %v3270_v57 }
 0x1ab   : > { %4194 = vst [vmem:[#allocation66_spill] sm:$0xff] %v3456_v39  ;;  %v957_v46 = vpop.f32.mrf.mxu0  ;;  %v1118_v34 = vpop.f32.mrf.mxu1  ;;  %4195 = vst [vmem:[#allocation67_spill] sm:$0xff] %v3460_v51  ;;  %v1187_v58 = vmul.f32 0.5, %v3273_v23  ;;  %v1189_v44 = vmul.f32 0.5, %v3276_v53  ;;  %v3475_v36 = vmul.f32 0.5, %v3312_v12  ;;  %2372 = verf.f32 %v1260_v49 }
 0x1ac   : > { %4196 = vst [vmem:[#allocation68_spill] sm:$0xff] %v3465_v55  ;;  %4197 = vst [vmem:[#allocation69_spill] sm:$0xff] %v3469_v56  ;;  %v2353_v39 = vpop.eup %2352  ;;  %v3478_v3 = vmul.f32 0.5, %v3324_v25  ;;  %v3481_v6 = vmul.f32 0.5, %v3339_v27  ;;  %2374 = verf.f32 %v1262_v50  ;;  %v1113_v13 = vadd.f32 %v1112_v42, %v3280_v10 }
 0x1ad   : > { %v961_v61 = vpop.f32.mrf.mxu0  ;;  %v1122_v32 = vpop.f32.mrf.mxu1  ;;  %v3489_v23 = vmul.f32 0.5, %v3354_v30  ;;  %v3492_v53 = vmul.f32 0.5, %v3362_v31  ;;  %2376 = verf.f32 %v1263_v52  ;;  %v1265_v12 = vmul.f32 0.70710677, %v1111_v47 }
 0x1ae   : > { %v2355_v59 = vpop.eup %2354  ;;  %v1379_v25 = vadd.f32 1.0, %v2353_v39  ;;  %v3495_v49 = vmul.f32 0.5, %v3383_v35  ;;  %v1264_v27 = vmul.f32 0.70710677, %v952_v60  ;;  %v956_v50 = vadd.f32 %v955_v17, %v3258_v0 }
 0x1af   : > { %v3484_v33 = vpop.f32.mrf.mxu0  ;;  %v3486_v4 = vpop.f32.mrf.mxu1  ;;  %v1381_v55 = vadd.f32 1.0, %v2355_v59  ;;  %v3503_v30 = vmul.f32 0.5, %v3395_v38  ;;  %v3506_v31 = vmul.f32 0.5, %v3403_v8  ;;  %v1117_v39 = vadd.f32 %v1116_v19, %v3262_v15 }
 0x1b0   : > { %v2357_v20 = vpop.eup %2356  ;;  %v3510_v35 = vmul.f32 0.5, %v3414_v41  ;;  %v3512_v51 = vmul.f32 0.5, %v1107_v24  ;;  %v3514_v17 = vmul.f32 0.5, %v950_v9  ;;  %v1266_v37 = vmul.f32 0.70710677, %v1113_v13 }
 0x1b1   : > { %v3498_v42 = vpop.f32.mrf.mxu0  ;;  %v3500_v56 = vpop.f32.mrf.mxu1  ;;  %v3520_v45 = vmul.f32 0.5, %v1111_v47  ;;  %2378 = verf.f32 %v1265_v12  ;;  %v3522_v8 = vmul.f32 0.5, %v952_v60  ;;  %v3524_v19 = vmul.f32 0.5, %v1113_v13 }
 0x1b2   : > { %v2359_v52 = vpop.eup %2358  ;;  %v1443_v41 = vmul.f32 %v1379_v25, %v1187_v58  ;;  %2380 = verf.f32 %v1264_v27  ;;  %v1267_v24 = vmul.f32 0.70710677, %v956_v50  ;;  %v958_v9 = vadd.f32 %v957_v46, %v3270_v57 }
 0x1b3   : > { %v3516_v5 = vpop.f32.mrf.mxu0  ;;  %v3518_v59 = vpop.f32.mrf.mxu1  ;;  %v1445_v28 = vmul.f32 %v1381_v55, %v1189_v44  ;;  %v1380_v18 = vadd.f32 1.0, %v2357_v20  ;;  %v1269_v16 = vmul.f32 0.70710677, %v1117_v39  ;;  %v1119_v29 = vadd.f32 %v1118_v34, %v3280_v10 }
 0x1b4   : > { %v2361_v38 = vpop.eup %2360  ;;  %v1382_v47 = vadd.f32 1.0, %v2359_v52  ;;  %2382 = verf.f32 %v1266_v37  ;;  %v3530_v60 = vmul.f32 0.5, %v956_v50  ;;  %v962_v13 = vadd.f32 %v961_v61, %v3258_v0 }
 0x1b5   : > { %v2363_v40 = vpop.eup %2362  ;;  %v3528_v14 = vpop.f32.mrf.mxu0  ;;  %v1383_v25 = vadd.f32 1.0, %v2361_v38  ;;  %v3535_v46 = vmul.f32 0.5, %v1117_v39  ;;  %v1123_v20 = vadd.f32 %v1122_v32, %v3262_v15  ;;  %v3539_v34 = vmul.f32 %v1443_v41, %v3284_v62 }
 0x1b6   : > { %v2365_v54 = vpop.eup %2364  ;;  %v3533_v12 = vpop.f32.mrf.mxu1  ;;  %v1385_v27 = vadd.f32 1.0, %v2363_v40  ;;  %2384 = verf.f32 %v1267_v24  ;;  %v1268_v37 = vmul.f32 0.70710677, %v958_v9  ;;  %v1509_v52 = vmul.f32 %v1445_v28, %v3288_v1 }
 0x1b7   : > { %v2367_v58 = vpop.eup %2366  ;;  %4198 = vst [vmem:[#allocation70_spill] sm:$0xff] %v3535_v46  ;;  %v1384_v44 = vadd.f32 1.0, %v2365_v54  ;;  %v1444_v61 = vmul.f32 %v1380_v18, %v3475_v36  ;;  %2386 = verf.f32 %v1269_v16  ;;  %v1270_v22 = vmul.f32 0.70710677, %v1119_v29  ;;  %v3543_v38 = vpop.f32.mrf.mxu0 }
 0x1b8   : > { %v2369_v55 = vpop.eup %2368  ;;  %v1446_v39 = vmul.f32 %v1382_v47, %v3478_v3  ;;  %v1386_v32 = vadd.f32 1.0, %v2367_v58  ;;  %v3546_v46 = vmul.f32 0.5, %v958_v9  ;;  %v1271_v62 = vmul.f32 0.70710677, %v962_v13  ;;  %v3548_v41 = vpop.f32.mrf.mxu1 }
 0x1b9   : > { %v2371_v50 = vpop.eup %2370  ;;  %v3551_v24 = vmul.f32 %v1383_v25, %v3481_v6  ;;  %v3554_v1 = vmul.f32 %v1385_v27, %v3489_v23  ;;  %v1273_v18 = vmul.f32 0.70710677, %v1123_v20  ;;  %v964_v28 = vadd.f32 %v3484_v33, %v3270_v57  ;;  %v3567_v23 = vpop.f32.mrf.mxu0 }
 0x1ba   : > { %v2373_v40 = vpop.eup %2372  ;;  %v1448_v36 = vmul.f32 %v1384_v44, %v3492_v53  ;;  %v1387_v3 = vadd.f32 1.0, %v2369_v55  ;;  %2388 = verf.f32 %v1268_v37  ;;  %v1125_v9 = vadd.f32 %v3486_v4, %v3280_v10  ;;  %v3570_v53 = vpop.f32.mrf.mxu1 }
 0x1bb   : > { %v2375_v54 = vpop.eup %2374  ;;  %v1389_v47 = vadd.f32 1.0, %v2371_v50  ;;  %v3561_v58 = vmul.f32 0.5, %v1119_v29  ;;  %2390 = verf.f32 %v1270_v22  ;;  %v3565_v6 = vadd.f32 %v3498_v42, %v3258_v0 }
 0x1bc   : > { %v2377_v16 = vpop.eup %2376  ;;  %v1450_v33 = vmul.f32 %v1386_v32, %v3495_v49  ;;  %v1388_v25 = vadd.f32 1.0, %v2373_v40  ;;  %v1390_v27 = vadd.f32 1.0, %v2375_v54  ;;  %2392 = verf.f32 %v1271_v62  ;;  %v3591_v54 = vpop.f32.mrf.mxu0 }
 0x1bd   : > { %v1391_v55 = vadd.f32 1.0, %v2377_v16  ;;  %2394 = verf.f32 %v1273_v18  ;;  %v1272_v4 = vmul.f32 0.70710677, %v964_v28  ;;  %v3574_v29 = vadd.f32 %v3500_v56, %v3262_v15 }
 0x1be   : > { %v2379_v22 = vpop.eup %2378  ;;  %v1274_v44 = vmul.f32 0.70710677, %v1125_v9  ;;  %v3578_v42 = vadd.f32 %v3516_v5, %v3270_v57  ;;  %v1508_v49 = vmul.f32 %v1444_v61, %v3292_v43  ;;  %v1510_v37 = vmul.f32 %v1446_v39, %v3296_v21 }
 0x1bf   : > { %v2381_v50 = vpop.eup %2380  ;;  %v3583_v40 = vmul.f32 %v1387_v3, %v3503_v30  ;;  %v3586_v32 = vmul.f32 %v1389_v47, %v3506_v31  ;;  %v3588_v62 = vmul.f32 0.5, %v962_v13  ;;  %v1275_v56 = vmul.f32 0.70710677, %v3565_v6  ;;  %v3605_v31 = vpop.f32.mrf.mxu1 }
 0x1c0   : > { %v3594_v5 = vmul.f32 %v1388_v25, %v3510_v35  ;;  %v3597_v43 = vmul.f32 %v1390_v27, %v3512_v51  ;;  %v3599_v21 = vmul.f32 0.5, %v1123_v20  ;;  %v3603_v30 = vadd.f32 %v3518_v59, %v3280_v10  ;;  %1706 = vmatprep.mubr.f32.mxu0 %v1508_v49  ;;  %1851 = vmatprep.mubr.f32.mxu1 %v1510_v37 }
 0x1c1   : > { %v2383_v13 = vpop.eup %2382  ;;  %v1393_v61 = vadd.f32 1.0, %v2379_v22  ;;  %2396 = verf.f32 %v1272_v4  ;;  %v1277_v39 = vmul.f32 0.70710677, %v3574_v29  ;;  %v3610_v35 = vadd.f32 %v3528_v14, %v3258_v0  ;;  %1707 = vmatmul.mubr.f32.vlgmr.msra.gmra.mxu0 %v3539_v34  ;;  %1852 = vmatmul.mubr.f32.vlgmr.msra.gmra.mxu1 %v1509_v52  ;;  %v3627_v34 = vpop.f32.mrf.mxu0 }
 0x1c2   : > { %v3614_v51 = vmul.f32 %v1391_v55, %v3514_v17  ;;  %2398 = verf.f32 %v1274_v44  ;;  %v1276_v59 = vmul.f32 0.70710677, %v3578_v42  ;;  %v3619_v20 = vadd.f32 %v3533_v12, %v3262_v15  ;;  %v3632_v27 = vpop.f32.mrf.mxu1 }
 0x1c3   : > { %v2385_v18 = vpop.eup %2384  ;;  %v1392_v16 = vadd.f32 1.0, %v2381_v50  ;;  %v3621_v3 = vmul.f32 0.5, %v964_v28  ;;  %2400 = verf.f32 %v1275_v56  ;;  %v3625_v14 = vadd.f32 %v3543_v38, %v3270_v57  ;;  %v3652_v44 = vpop.f32.mrf.mxu0 }
 0x1c4   : > { %v2387_v17 = vpop.eup %2386  ;;  %v1394_v52 = vadd.f32 1.0, %v2383_v13  ;;  %v1278_v47 = vmul.f32 0.70710677, %v3603_v30  ;;  %v1512_v25 = vmul.f32 %v1448_v36, %v3308_v7  ;;  %v1514_v12 = vmul.f32 %v1450_v33, %v3316_v63 }
 0x1c5   : > { %v3634_v55 = vmul.f32 0.5, %v1125_v9  ;;  %2402 = verf.f32 %v1277_v39  ;;  %v1279_v28 = vmul.f32 0.70710677, %v3610_v35  ;;  %v3639_v38 = vadd.f32 %v3548_v41, %v3280_v10  ;;  %v3675_v39 = vpop.f32.mrf.mxu0 }
 0x1c6   : > { %v1395_v4 = vadd.f32 1.0, %v2385_v18  ;;  %2404 = verf.f32 %v1276_v59  ;;  %v1281_v22 = vmul.f32 0.70710677, %v3619_v20  ;;  %1711 = vmatprep.mubr.f32.mxu0 %v1512_v25  ;;  %1856 = vmatprep.mubr.f32.mxu1 %v1514_v12  ;;  %v1511_v63 = vmul.f32 %v3551_v24, %v3300_v48 }
 0x1c7   : > { %v2389_v7 = vpop.eup %2388  ;;  %v3645_v36 = vmul.f32 %v1393_v61, %v3520_v45  ;;  %v1280_v9 = vmul.f32 0.70710677, %v3625_v14  ;;  %v980_v33 = vadd.f32 %v3567_v23, %v3258_v0  ;;  %v1513_v41 = vmul.f32 %v3554_v1, %v3304_v2  ;;  %v3661_v45 = vpop.f32.mrf.mxu1 }
 0x1c8   : > { %v2391_v49 = vpop.eup %2390  ;;  %v1456_v37 = vmul.f32 %v1392_v16, %v3522_v8  ;;  %v3656_v50 = vmul.f32 %v1394_v52, %v3524_v19  ;;  %v3659_v48 = vmul.f32 0.5, %v3565_v6  ;;  %2406 = verf.f32 %v1278_v47  ;;  %1712 = vmatmul.mubr.f32.gmra.mxu0 %v1511_v63 }
 0x1c9   : > { %v2393_v24 = vpop.eup %2392  ;;  %v1397_v23 = vadd.f32 1.0, %v2387_v17  ;;  %v3664_v56 = vmul.f32 0.5, %v3574_v29  ;;  %2408 = verf.f32 %v1279_v28  ;;  %v1282_v2 = vmul.f32 0.70710677, %v3639_v38  ;;  %1857 = vmatmul.mubr.f32.gmra.mxu1 %v1513_v41  ;;  %v3683_v16 = vpop.f32.mrf.mxu1  ;;  %v4199_v17 = vld [vmem:[#allocation70_spill] sm:$0xff] }
 0x1ca   : > { %v2395_v8 = vpop.eup %2394  ;;  %v3668_v19 = vmul.f32 %v1395_v4, %v3530_v60  ;;  %v3671_v1 = vmul.f32 0.5, %v3578_v42  ;;  %2410 = verf.f32 %v1281_v22  ;;  %v1141_v6 = vadd.f32 %v3570_v53, %v3262_v15 }
 0x1cb   : > { %v1396_v13 = vadd.f32 1.0, %v2389_v7  ;;  %v1398_v61 = vadd.f32 1.0, %v2391_v49  ;;  %2412 = verf.f32 %v1280_v9  ;;  %v1283_v29 = vmul.f32 0.70710677, %v980_v33 }
 0x1cc   : > { %v1399_v59 = vadd.f32 1.0, %v2393_v24  ;;  %v982_v18 = vadd.f32 %v3591_v54, %v3270_v57  ;;  %v1516_v60 = vmul.f32 %v3594_v5, %v3332_v11  ;;  %v1518_v42 = vmul.f32 %v3597_v43, %v3336_v26  ;;  %v4200_v11 = vld [vmem:[#allocation43_spill] sm:$0xff]  ;;  %v4201_v5 = vld [vmem:[#allocation44_spill] sm:$0xff] }
 0x1cd   : > { %v3686_v53 = vmul.f32 %v1397_v23, %v4199_v17  ;;  %v1401_v52 = vadd.f32 1.0, %v2395_v8  ;;  %2414 = verf.f32 %v1282_v2  ;;  %v1143_v47 = vadd.f32 %v3605_v31, %v3280_v10  ;;  %v4205_v17 = vld [vmem:[#allocation46_spill] sm:$0xff] }
 0x1ce   : > { %v2397_v25 = vpop.eup %2396  ;;  %v3691_v12 = vmul.f32 0.5, %v3603_v30  ;;  %v1285_v54 = vmul.f32 0.70710677, %v1141_v6  ;;  %1716 = vmatprep.mubr.f32.mxu0 %v1516_v60  ;;  %1861 = vmatprep.mubr.f32.mxu1 %v1518_v42  ;;  %v1515_v26 = vmul.f32 %v3583_v40, %v4200_v11  ;;  %v1517_v43 = vmul.f32 %v3586_v32, %v4201_v5  ;;  %v3704_v30 = vpop.f32.mrf.mxu0  ;;  %v4204_v42 = vld [vmem:[#allocation45_spill] sm:$0xff] }
 0x1cf   : > { %v2399_v28 = vpop.eup %2398  ;;  %v1460_v4 = vmul.f32 %v1396_v13, %v3546_v46  ;;  %v3699_v22 = vmul.f32 0.5, %v3610_v35  ;;  %v3702_v31 = vmul.f32 0.5, %v3619_v20  ;;  %2416 = verf.f32 %v1283_v29  ;;  %v3715_v35 = vpop.f32.mrf.mxu1 }
 0x1d0   : > { %v2401_v63 = vpop.eup %2400  ;;  %v3707_v7 = vmul.f32 %v1398_v61, %v3561_v58  ;;  %v3710_v40 = vmul.f32 %v1399_v59, %v3588_v62  ;;  %v3713_v32 = vmul.f32 0.5, %v3625_v14  ;;  %v1284_v46 = vmul.f32 0.70710677, %v982_v18  ;;  %1717 = vmatmul.mubr.f32.gmra.mxu0 %v1515_v26  ;;  %1862 = vmatmul.mubr.f32.gmra.mxu1 %v1517_v43  ;;  %v4202_v14 = vld [vmem:[#allocation47_spill] sm:$0xff] }
 0x1d1   : > { %v3718_v20 = vmul.f32 %v1401_v52, %v3599_v21  ;;  %v1400_v9 = vadd.f32 1.0, %v2397_v25  ;;  %v3721_v41 = vmul.f32 0.5, %v3639_v38  ;;  %v1286_v58 = vmul.f32 0.70710677, %v1143_v47  ;;  %v3732_v38 = vpop.f32.mrf.mxu0  ;;  %v3740_v59 = vpop.f32.mrf.mxu1 }
 0x1d2   : > { %v2403_v49 = vpop.eup %2402  ;;  %v3723_v24 = vmul.f32 0.5, %v980_v33  ;;  %2418 = verf.f32 %v1285_v54  ;;  %v986_v62 = vadd.f32 %v3627_v34, %v3258_v0  ;;  %v1520_v23 = vmul.f32 %v1456_v37, %v4202_v14  ;;  %v4203_v34 = vld [vmem:[#allocation48_spill] sm:$0xff] }
 0x1d3   : > { %v2405_v2 = vpop.eup %2404  ;;  %v1402_v8 = vadd.f32 1.0, %v2399_v28  ;;  %v1403_v13 = vadd.f32 1.0, %v2401_v63  ;;  %v3728_v61 = vmul.f32 0.5, %v1141_v6  ;;  %v1147_v21 = vadd.f32 %v3632_v27, %v3262_v15 }
 0x1d4   : > { %v3734_v29 = vmul.f32 0.5, %v982_v18  ;;  %2420 = verf.f32 %v1284_v46  ;;  %v988_v33 = vadd.f32 %v3652_v44, %v3270_v57  ;;  %1721 = vmatprep.mubr.f32.mxu0 %v1520_v23  ;;  %v1522_v37 = vmul.f32 %v3656_v50, %v4203_v34 }
 0x1d5   : > { %v2407_v60 = vpop.eup %2406  ;;  %v1405_v6 = vadd.f32 1.0, %v2403_v49  ;;  %2422 = verf.f32 %v1286_v58  ;;  %v1519_v27 = vmul.f32 %v3614_v51, %v4204_v42  ;;  %v1521_v18 = vmul.f32 %v3645_v36, %v4205_v17  ;;  %v999_v36 = vpop.f32.mrf.mxu0  ;;  %v4208_v42 = vld [vmem:[#allocation49_spill] sm:$0xff] }
 0x1d6   : > { %v2409_v52 = vpop.eup %2408  ;;  %v1464_v25 = vmul.f32 %v1400_v9, %v3621_v3  ;;  %v1404_v54 = vadd.f32 1.0, %v2405_v2  ;;  %v1287_v44 = vmul.f32 0.70710677, %v986_v62  ;;  %v1149_v11 = vadd.f32 %v3661_v45, %v3280_v10  ;;  %1866 = vmatprep.mubr.f32.mxu1 %v1522_v37  ;;  %v4206_v45 = vld [vmem:[#allocation51_spill] sm:$0xff]  ;;  %v1160_v58 = vpop.f32.mrf.mxu1 }
 0x1d7   : > { %v2411_v50 = vpop.eup %2410  ;;  %v1466_v26 = vmul.f32 %v1402_v8, %v3634_v55  ;;  %v3751_v5 = vmul.f32 %v1403_v13, %v3659_v48  ;;  %v3753_v43 = vmul.f32 0.5, %v1143_v47  ;;  %v1289_v51 = vmul.f32 0.70710677, %v1147_v21  ;;  %1722 = vmatmul.mubr.f32.gmra.mxu0 %v1519_v27  ;;  %1867 = vmatmul.mubr.f32.gmra.mxu1 %v1521_v18  ;;  %v4209_v27 = vld [vmem:[#allocation50_spill] sm:$0xff] }
 0x1d8   : > { %v2413_v28 = vpop.eup %2412  ;;  %v1406_v3 = vadd.f32 1.0, %v2407_v60  ;;  %v1288_v63 = vmul.f32 0.70710677, %v988_v33  ;;  %v992_v46 = vadd.f32 %v3675_v39, %v3258_v0  ;;  %v1524_v9 = vmul.f32 %v1460_v4, %v4206_v45  ;;  %v3779_v60 = vpop.f32.mrf.mxu1 }
 0x1d9   : > { %v3759_v55 = vmul.f32 %v1405_v6, %v3664_v56  ;;  %v1407_v48 = vadd.f32 1.0, %v2409_v52  ;;  %v3761_v49 = vmul.f32 0.5, %v986_v62  ;;  %v3763_v47 = vmul.f32 0.5, %v1147_v21  ;;  %v4207_v56 = vld [vmem:[#allocation52_spill] sm:$0xff]  ;;  %v3772_v62 = vpop.f32.mrf.mxu0 }
 0x1da   : > { %v2415_v14 = vpop.eup %2414  ;;  %v3766_v23 = vmul.f32 %v1404_v54, %v3671_v1  ;;  %2424 = verf.f32 %v1287_v44  ;;  %v1290_v2 = vmul.f32 0.70710677, %v1149_v11  ;;  %v1153_v39 = vadd.f32 %v3683_v16, %v3262_v15  ;;  %1726 = vmatprep.mubr.f32.mxu0 %v1524_v9 }
 0x1db   : > { %v1409_v4 = vadd.f32 1.0, %v2411_v50  ;;  %v1408_v8 = vadd.f32 1.0, %v2413_v28  ;;  %2426 = verf.f32 %v1289_v51  ;;  %v1526_v13 = vmul.f32 %v3707_v7, %v4207_v56  ;;  %v4210_v50 = vld [vmem:[#allocation55_spill] sm:$0xff]  ;;  %v4211_v51 = vld [vmem:[#allocation56_spill] sm:$0xff] }
 0x1dc   : > { %v2417_v21 = vpop.eup %2416  ;;  %v3775_v34 = vmul.f32 %v1406_v3, %v3691_v12  ;;  %v3777_v1 = vmul.f32 0.5, %v988_v33  ;;  %2428 = verf.f32 %v1288_v63  ;;  %v1291_v37 = vmul.f32 0.70710677, %v992_v46 }
 0x1dd   : > { %v3782_v16 = vmul.f32 %v1407_v48, %v3699_v22  ;;  %v1410_v6 = vadd.f32 1.0, %v2415_v14  ;;  %1871 = vmatprep.mubr.f32.mxu1 %v1526_v13  ;;  %v1523_v7 = vmul.f32 %v3668_v19, %v4208_v42  ;;  %v1525_v17 = vmul.f32 %v3686_v53, %v4209_v27  ;;  %v1005_v53 = vpop.f32.mrf.mxu0 }
 0x1de   : > { %v3788_v18 = vmul.f32 0.5, %v1149_v11  ;;  %2430 = verf.f32 %v1290_v2  ;;  %v1293_v12 = vmul.f32 0.70710677, %v1153_v39  ;;  %v994_v33 = vadd.f32 %v3704_v30, %v3270_v57  ;;  %v4213_v2 = vld [vmem:[#allocation54_spill] sm:$0xff] }
 0x1df   : > { %v2419_v52 = vpop.eup %2418  ;;  %v3793_v54 = vmul.f32 %v1409_v4, %v3702_v31  ;;  %v3796_v22 = vmul.f32 %v1408_v8, %v3713_v32  ;;  %v1411_v44 = vadd.f32 1.0, %v2417_v21  ;;  %v1155_v19 = vadd.f32 %v3715_v35, %v3280_v10  ;;  %1727 = vmatmul.mubr.f32.gmra.mxu0 %v1523_v7  ;;  %1872 = vmatmul.mubr.f32.gmra.mxu1 %v1525_v17  ;;  %v1166_v31 = vpop.f32.mrf.mxu1 }
 0x1e0   : > { %2432 = verf.f32 %v1291_v37  ;;  %v3801_v11 = vadd.f32 %v999_v36, %v3270_v57  ;;  %v1528_v30 = vmul.f32 %v1464_v25, %v4210_v50  ;;  %v1530_v28 = vmul.f32 %v1466_v26, %v4211_v51 }
 0x1e1   : > { %v2421_v3 = vpop.eup %2420  ;;  %v3806_v32 = vmul.f32 %v1410_v6, %v3721_v41  ;;  %v3808_v63 = vmul.f32 0.5, %v992_v46  ;;  %v3810_v45 = vmul.f32 0.5, %v1153_v39  ;;  %v998_v35 = vadd.f32 %v3732_v38, %v3258_v0  ;;  %v4212_v46 = vld [vmem:[#allocation53_spill] sm:$0xff]  ;;  %v1009_v39 = vpop.f32.mrf.mxu0  ;;  %v4214_v6 = vld [vmem:[#allocation59_spill] sm:$0xff] }
 0x1e2   : > { %v2423_v9 = vpop.eup %2422  ;;  %v1413_v48 = vadd.f32 1.0, %v2419_v52  ;;  %2434 = verf.f32 %v1293_v12  ;;  %v1292_v36 = vmul.f32 0.70710677, %v994_v33  ;;  %v3815_v25 = vadd.f32 %v1160_v58, %v3280_v10  ;;  %1731 = vmatprep.mubr.f32.mxu0 %v1528_v30  ;;  %1876 = vmatprep.mubr.f32.mxu1 %v1530_v28  ;;  %v1170_v13 = vpop.f32.mrf.mxu1 }
 0x1e3   : > { %v1294_v26 = vmul.f32 0.70710677, %v1155_v19  ;;  %v3819_v41 = vadd.f32 %v3740_v59, %v3262_v15  ;;  %v1527_v14 = vmul.f32 %v3710_v40, %v4212_v46  ;;  %v1529_v38 = vmul.f32 %v3718_v20, %v4213_v2 }
 0x1e4   : > { %v3826_v4 = vmul.f32 %v1411_v44, %v3723_v24  ;;  %v1412_v8 = vadd.f32 1.0, %v2421_v3  ;;  %v3828_v58 = vmul.f32 0.5, %v994_v33  ;;  %v1296_v56 = vmul.f32 0.70710677, %v3801_v11  ;;  %v1011_v33 = vpop.f32.mrf.mxu0 }
 0x1e5   : > { %v1414_v21 = vadd.f32 1.0, %v2423_v9  ;;  %v3831_v37 = vmul.f32 0.5, %v1155_v19  ;;  %v1295_v59 = vmul.f32 0.70710677, %v998_v35  ;;  %1732 = vmatmul.mubr.f32.gmra.mxu0 %v1527_v14  ;;  %1877 = vmatmul.mubr.f32.gmra.mxu1 %v1529_v38  ;;  %v3834_v40 = vadd.f32 %v1005_v53, %v3270_v57  ;;  %v4215_v19 = vld [vmem:[#allocation60_spill] sm:$0xff]  ;;  %v1172_v53 = vpop.f32.mrf.mxu1 }
 0x1e6   : > { %2436 = verf.f32 %v1292_v36  ;;  %v1298_v20 = vmul.f32 0.70710677, %v3815_v25  ;;  %v3838_v24 = vadd.f32 %v1166_v31, %v3280_v10  ;;  %v1532_v42 = vmul.f32 %v3766_v23, %v4214_v6  ;;  %v4216_v31 = vld [vmem:[#allocation57_spill] sm:$0xff]  ;;  %v1015_v36 = vpop.f32.mrf.mxu0 }
 0x1e7   : > { %v2425_v7 = vpop.eup %2424  ;;  %v3843_v27 = vmul.f32 %v1413_v48, %v3728_v61  ;;  %2438 = verf.f32 %v1294_v26  ;;  %v1297_v17 = vmul.f32 0.70710677, %v3819_v41  ;;  %v3848_v12 = vadd.f32 %v3772_v62, %v3258_v0  ;;  %v4217_v48 = vld [vmem:[#allocation58_spill] sm:$0xff]  ;;  %v1176_v14 = vpop.f32.mrf.mxu1 }
 0x1e8   : > { %v2427_v52 = vpop.eup %2426  ;;  %2440 = verf.f32 %v1296_v56  ;;  %v3852_v44 = vadd.f32 %v3779_v60, %v3262_v15  ;;  %v1300_v23 = vmul.f32 0.70710677, %v3834_v40  ;;  %1736 = vmatprep.mubr.f32.mxu0 %v1532_v42  ;;  %v1534_v61 = vmul.f32 %v3775_v34, %v4215_v19  ;;  %v4219_v56 = vld [vmem:[#allocation64_spill] sm:$0xff] }
 0x1e9   : > { %v2429_v50 = vpop.eup %2428  ;;  %v3858_v30 = vmul.f32 %v1412_v8, %v3734_v29  ;;  %v3861_v62 = vmul.f32 %v1414_v21, %v3753_v43  ;;  %v3863_v51 = vmul.f32 0.5, %v998_v35  ;;  %2442 = verf.f32 %v1295_v59  ;;  %v4218_v8 = vld [vmem:[#allocation63_spill] sm:$0xff] }
 0x1ea   : > { %v1415_v28 = vadd.f32 1.0, %v2425_v7  ;;  %2444 = verf.f32 %v1298_v20  ;;  %v1302_v60 = vmul.f32 0.70710677, %v3838_v24  ;;  %1881 = vmatprep.mubr.f32.mxu1 %v1534_v61  ;;  %v1531_v3 = vmul.f32 %v3751_v5, %v4216_v31 }
 0x1eb   : > { %v2431_v34 = vpop.eup %2430  ;;  %v1417_v9 = vadd.f32 1.0, %v2427_v52  ;;  %2446 = verf.f32 %v1297_v17  ;;  %v1299_v29 = vmul.f32 0.70710677, %v3848_v12  ;;  %v1533_v43 = vmul.f32 %v3759_v55, %v4217_v48  ;;  %v1178_v52 = vpop.f32.mrf.mxu1 }
 0x1ec   : > { %v1416_v35 = vadd.f32 1.0, %v2429_v50  ;;  %v1301_v26 = vmul.f32 0.70710677, %v3852_v44  ;;  %2448 = verf.f32 %v1300_v23  ;;  %1737 = vmatmul.mubr.f32.gmra.mxu0 %v1531_v3  ;;  %v3873_v46 = vadd.f32 %v1011_v33, %v3270_v57 }
 0x1ed   : > { %v2433_v2 = vpop.eup %2432  ;;  %v3876_v5 = vadd.f32 %v1009_v39, %v3258_v0  ;;  %1882 = vmatmul.mubr.f32.gmra.mxu1 %v1533_v43  ;;  %v3879_v38 = vadd.f32 %v1172_v53, %v3280_v10  ;;  %v1536_v55 = vmul.f32 %v3796_v22, %v4218_v8  ;;  %v1538_v21 = vmul.f32 %v3806_v32, %v4219_v56  ;;  %v1017_v32 = vpop.f32.mrf.mxu0 }
 0x1ee   : > { %v1418_v59 = vadd.f32 1.0, %v2431_v34  ;;  %2450 = verf.f32 %v1302_v60  ;;  %v3886_v20 = vadd.f32 %v1170_v13, %v3262_v15  ;;  %v1304_v6 = vmul.f32 0.70710677, %v3873_v46  ;;  %v1182_v48 = vpop.f32.mrf.mxu1 }
 0x1ef   : > { %v2435_v42 = vpop.eup %2434  ;;  %v3890_v39 = vmul.f32 0.5, %v3819_v41  ;;  %v3893_v7 = vmul.f32 0.5, %v3801_v11  ;;  %2452 = verf.f32 %v1299_v29  ;;  %v1306_v22 = vmul.f32 0.70710677, %v3879_v38  ;;  %1741 = vmatprep.mubr.f32.mxu0 %v1536_v55  ;;  %1886 = vmatprep.mubr.f32.mxu1 %v1538_v21 }
 0x1f0   : > { %v3897_v17 = vmul.f32 %v1415_v28, %v3761_v49  ;;  %v1419_v13 = vadd.f32 1.0, %v2433_v2  ;;  %v3900_v33 = vmul.f32 0.5, %v3815_v25  ;;  %2454 = verf.f32 %v1301_v26  ;;  %v4221_v28 = vld [vmem:[#allocation62_spill] sm:$0xff] }
 0x1f1   : > { %v3903_v41 = vmul.f32 %v1417_v9, %v3763_v47  ;;  %v1303_v11 = vmul.f32 0.70710677, %v3876_v5  ;;  %2456 = verf.f32 %v1304_v6  ;;  %v3907_v23 = vadd.f32 %v1015_v36, %v3258_v0  ;;  %v4220_v47 = vld [vmem:[#allocation61_spill] sm:$0xff]  ;;  %v4222_v36 = vld [vmem:[#allocation67_spill] sm:$0xff] }
 0x1f2   : > { %v1480_v19 = vmul.f32 %v1416_v35, %v3777_v1  ;;  %v3911_v49 = vmul.f32 %v1418_v59, %v3788_v18  ;;  %v1305_v61 = vmul.f32 0.70710677, %v3886_v20  ;;  %2458 = verf.f32 %v1306_v22  ;;  %v1021_v1 = vpop.f32.mrf.mxu0  ;;  %v4224_v22 = vld [vmem:[#allocation65_spill] sm:$0xff] }
 0x1f3   : > { %v2437_v25 = vpop.eup %2436  ;;  %v3915_v53 = vadd.f32 %v1176_v14, %v3262_v15  ;;  %v1535_v50 = vmul.f32 %v3782_v16, %v4220_v47  ;;  %v1537_v60 = vmul.f32 %v3793_v54, %v4221_v28  ;;  %v3922_v31 = vadd.f32 %v1017_v32, %v3270_v57  ;;  %v4223_v14 = vld [vmem:[#allocation68_spill] sm:$0xff]  ;;  %v1184_v32 = vpop.f32.mrf.mxu1 }
 0x1f4   : > { %v2439_v3 = vpop.eup %2438  ;;  %v3925_v18 = vmul.f32 %v1419_v13, %v3808_v63  ;;  %v1421_v34 = vadd.f32 1.0, %v2435_v42  ;;  %v3928_v9 = vmul.f32 0.5, %v3834_v40  ;;  %v3931_v29 = vadd.f32 %v1178_v52, %v3280_v10  ;;  %v1023_v59 = vpop.f32.mrf.mxu0 }
 0x1f5   : > { %v2441_v16 = vpop.eup %2440  ;;  %2460 = verf.f32 %v1303_v11  ;;  %v1307_v54 = vmul.f32 0.70710677, %v3907_v23  ;;  %1742 = vmatmul.mubr.f32.gmra.mxu0 %v1535_v50  ;;  %1887 = vmatmul.mubr.f32.gmra.mxu1 %v1537_v60  ;;  %v1308_v43 = vmul.f32 0.70710677, %v3922_v31  ;;  %v1540_v63 = vmul.f32 %v3858_v30, %v4222_v36  ;;  %v4226_v60 = vld [vmem:[#allocation69_spill] sm:$0xff]  ;;  %v4228_v36 = vld [vmem:[#allocation16_spill] sm:$0xff] }
 0x1f6   : > { %v2443_v35 = vpop.eup %2442  ;;  %v1420_v26 = vadd.f32 1.0, %v2437_v25  ;;  %2462 = verf.f32 %v1305_v61  ;;  %v1310_v40 = vmul.f32 0.70710677, %v3931_v29  ;;  %v1542_v2 = vmul.f32 %v3861_v62, %v4223_v14  ;;  %v4230_v14 = vld [vmem:[#allocation21_spill] sm:$0xff] }
 0x1f7   : > { %v2445_v8 = vpop.eup %2444  ;;  %v1422_v55 = vadd.f32 1.0, %v2439_v3  ;;  %v1309_v56 = vmul.f32 0.70710677, %v3915_v53  ;;  %2464 = verf.f32 %v1308_v43  ;;  %1746 = vmatprep.mubr.f32.mxu0 %v1540_v63  ;;  %v3942_v21 = vadd.f32 %v1021_v1, %v3258_v0  ;;  %v4225_v0 = vld [vmem:[#allocation66_spill] sm:$0xff] }
 0x1f8   : > { %v2447_v6 = vpop.eup %2446  ;;  %v1424_v30 = vadd.f32 1.0, %v2441_v16  ;;  %2466 = verf.f32 %v1310_v40  ;;  %1891 = vmatprep.mubr.f32.mxu1 %v1542_v2  ;;  %v3945_v42 = vadd.f32 %v1182_v48, %v3262_v15  ;;  %v1539_v62 = vmul.f32 %v3826_v4, %v4224_v22 }
 0x1f9   : > { %v2449_v13 = vpop.eup %2448  ;;  %v1485_v52 = vmul.f32 %v1421_v34, %v3810_v45  ;;  %2468 = verf.f32 %v1307_v54  ;;  %v1311_v11 = vmul.f32 0.70710677, %v3942_v21  ;;  %v1541_v61 = vmul.f32 %v3843_v27, %v4225_v0 }
 0x1fa   : > { %v1484_v25 = vmul.f32 %v1420_v26, %v3828_v58  ;;  %v1426_v47 = vadd.f32 1.0, %v2445_v8  ;;  %v1313_v50 = vmul.f32 0.70710677, %v3945_v42  ;;  %1747 = vmatmul.mubr.f32.gmra.mxu0 %v1539_v62  ;;  %v3956_v15 = vadd.f32 %v1023_v59, %v3270_v57  ;;  %v4229_v26 = vld [vmem:[#allocation17_spill] sm:$0xff] }
 0x1fb   : > { %v2451_v4 = vpop.eup %2450  ;;  %v1486_v28 = vmul.f32 %v1422_v55, %v3831_v37  ;;  %2470 = verf.f32 %v1309_v56  ;;  %1892 = vmatmul.mubr.f32.gmra.mxu1 %v1541_v61  ;;  %v3960_v45 = vadd.f32 %v1184_v32, %v3280_v10  ;;  %v1544_v1 = vmul.f32 %v1480_v19, %v4226_v60  ;;  %v4227_v37 = vld [vmem:[#allocation18_spill] sm:$0xff] }
 0x1fc   : > { %v2453_v27 = vpop.eup %2452  ;;  %v1423_v3 = vadd.f32 1.0, %v2443_v35  ;;  %v1488_v58 = vmul.f32 %v1424_v30, %v3893_v7  ;;  %2472 = verf.f32 %v1311_v11  ;;  %v1312_v34 = vmul.f32 0.70710677, %v3956_v15  ;;  %v4232_v30 = vld [vmem:[#allocation25_spill] sm:$0xff] }
 0x1fd   : > { %v2455_v48 = vpop.eup %2454  ;;  %v1428_v57 = vadd.f32 1.0, %v2449_v13  ;;  %2474 = verf.f32 %v1313_v50  ;;  %v1314_v16 = vmul.f32 0.70710677, %v3960_v45  ;;  %1751 = vmatprep.mubr.f32.mxu0 %v1544_v1  ;;  %v1546_v54 = vmul.f32 %v3911_v49, %v4227_v37 }
 0x1fe   : > { %v2457_v10 = vpop.eup %2456  ;;  %v1490_v43 = vmul.f32 %v1426_v47, %v3900_v33  ;;  %v1430_v19 = vadd.f32 1.0, %v2451_v4  ;;  %2476 = verf.f32 %v1312_v34  ;;  %v1543_v7 = vmul.f32 %v3897_v17, %v4228_v36  ;;  %v4231_v33 = vld [vmem:[#allocation22_spill] sm:$0xff] }
 0x1ff   : > { %v2459_v63 = vpop.eup %2458  ;;  %v1425_v35 = vadd.f32 1.0, %v2447_v6  ;;  %2478 = verf.f32 %v1314_v16  ;;  %1896 = vmatprep.mubr.f32.mxu1 %v1546_v54  ;;  %v1545_v40 = vmul.f32 %v3903_v41, %v4229_v26  ;;  %v1548_v2 = vmul.f32 %v1484_v25, %v4230_v14  ;;  %v4235_v25 = vld [vmem:[#allocation20_spill] sm:$0xff]  ;;  %v4238_v16 = vld [vmem:[#allocation30_spill] sm:$0xff]  ;;  %v4240_v14 = vld [vmem:[#allocation33_spill] sm:$0xff] }
 0x200   : > { %v1235_v8 = vmul.f32 0.5, %v3848_v12  ;;  %v1427_v49 = vadd.f32 1.0, %v2453_v27  ;;  %v1238_v55 = vmul.f32 0.5, %v3838_v24  ;;  %1752 = vmatmul.mubr.f32.gmra.mxu0 %v1543_v7  ;;  %v1550_v56 = vmul.f32 %v1486_v28, %v4231_v33  ;;  %v4233_v12 = vld [vmem:[#allocation19_spill] sm:$0xff]  ;;  %v4234_v24 = vld [vmem:[#allocation26_spill] sm:$0xff] }
 0x201   : > { %v1487_v59 = vmul.f32 %v1423_v3, %v3863_v51  ;;  %v1492_v17 = vmul.f32 %v1428_v57, %v3928_v9  ;;  %v1432_v6 = vadd.f32 1.0, %v2457_v10  ;;  %1897 = vmatmul.mubr.f32.gmra.mxu1 %v1545_v40  ;;  %1756 = vmatprep.mubr.f32.mxu0 %v1548_v2  ;;  %v1552_v22 = vmul.f32 %v1488_v58, %v4232_v30  ;;  %v4236_v58 = vld [vmem:[#allocation29_spill] sm:$0xff]  ;;  %v4239_v10 = vld [vmem:[#allocation24_spill] sm:$0xff] }
 0x202   : > { %v2461_v41 = vpop.eup %2460  ;;  %v1494_v62 = vmul.f32 %v1430_v19, %v1238_v55  ;;  %v1434_v32 = vadd.f32 1.0, %v2459_v63  ;;  %1901 = vmatprep.mubr.f32.mxu1 %v1550_v56  ;;  %v1547_v13 = vmul.f32 %v3925_v18, %v4233_v12  ;;  %v1554_v11 = vmul.f32 %v1490_v43, %v4234_v24  ;;  %v4241_v55 = vld [vmem:[#allocation27_spill] sm:$0xff]  ;;  %v4242_v56 = vld [vmem:[#allocation34_spill] sm:$0xff] }
 0x203   : > { %v2463_v0 = vpop.eup %2462  ;;  %v1489_v61 = vmul.f32 %v1425_v35, %v3890_v39  ;;  %v1429_v51 = vadd.f32 1.0, %v2455_v48  ;;  %v1240_v9 = vmul.f32 0.5, %v3873_v46  ;;  %v1549_v47 = vmul.f32 %v1485_v52, %v4235_v25  ;;  %v4237_v52 = vld [vmem:[#allocation23_spill] sm:$0xff]  ;;  %v4246_v25 = vld [vmem:[#allocation38_spill] sm:$0xff] }
 0x204   : > { %v2465_v50 = vpop.eup %2464  ;;  %v1491_v4 = vmul.f32 %v1427_v49, %v1235_v8  ;;  %v1237_v28 = vmul.f32 0.5, %v3852_v44  ;;  %v1242_v60 = vmul.f32 0.5, %v3879_v38  ;;  %1757 = vmatmul.mubr.f32.gmra.mxu0 %v1547_v13  ;;  %v1431_v27 = vadd.f32 1.0, %v2461_v41 }
 0x205   : > { %v2467_v1 = vpop.eup %2466  ;;  %v1496_v18 = vmul.f32 %v1432_v6, %v1240_v9  ;;  %v1436_v3 = vadd.f32 1.0, %v2465_v50  ;;  %1902 = vmatmul.mubr.f32.gmra.mxu1 %v1549_v47  ;;  %1761 = vmatprep.mubr.f32.mxu0 %v1552_v22  ;;  %v1556_v39 = vmul.f32 %v1492_v17, %v4236_v58  ;;  %v1551_v57 = vmul.f32 %v1487_v59, %v4237_v52 }
 0x206   : > { %v2469_v34 = vpop.eup %2468  ;;  %v1498_v48 = vmul.f32 %v1434_v32, %v1242_v60  ;;  %v1438_v46 = vadd.f32 1.0, %v2467_v1  ;;  %1906 = vmatprep.mubr.f32.mxu1 %v1554_v11  ;;  %v1558_v37 = vmul.f32 %v1494_v62, %v4238_v16  ;;  %v1493_v44 = vmul.f32 %v1429_v51, %v1237_v28  ;;  %v4244_v11 = vld [vmem:[#allocation37_spill] sm:$0xff]  ;;  %v4245_v51 = vld [vmem:[#allocation31_spill] sm:$0xff] }
 0x207   : > { %v1433_v54 = vadd.f32 1.0, %v2463_v0  ;;  %v1244_v38 = vmul.f32 0.5, %v3922_v31  ;;  %v1553_v43 = vmul.f32 %v1489_v61, %v4239_v10  ;;  %v1239_v36 = vmul.f32 0.5, %v3876_v5  ;;  %v4248_v1 = vld [vmem:[#allocation41_spill] sm:$0xff] }
 0x208   : > { %v2471_v19 = vpop.eup %2470  ;;  %v1246_v7 = vmul.f32 0.5, %v3931_v29  ;;  %1762 = vmatmul.mubr.f32.gmra.mxu0 %v1551_v57  ;;  %v1241_v35 = vmul.f32 0.5, %v3886_v20  ;;  %v1435_v26 = vadd.f32 1.0, %v2469_v34  ;;  %v1560_v2 = vmul.f32 %v1496_v18, %v4240_v14  ;;  %v4243_v20 = vld [vmem:[#allocation28_spill] sm:$0xff] }
 0x209   : > { %v2473_v63 = vpop.eup %2472  ;;  %v1500_v40 = vmul.f32 %v1436_v3, %v1244_v38  ;;  %1907 = vmatmul.mubr.f32.gmra.mxu1 %v1553_v43  ;;  %1766 = vmatprep.mubr.f32.mxu0 %v1556_v39  ;;  %v1495_v49 = vmul.f32 %v1431_v27, %v1239_v36  ;;  %v1555_v33 = vmul.f32 %v1491_v4, %v4241_v55  ;;  %v1243_v17 = vmul.f32 0.5, %v3907_v23  ;;  %v4247_v4 = vld [vmem:[#allocation32_spill] sm:$0xff]  ;;  %v4249_v3 = vld [vmem:[#allocation35_spill] sm:$0xff]  ;;  %v4250_v39 = vld [vmem:[#allocation42_spill] sm:$0xff] }
 0x20a   : > { %v2475_v8 = vpop.eup %2474  ;;  %v1502_v31 = vmul.f32 %v1438_v46, %v1246_v7  ;;  %1911 = vmatprep.mubr.f32.mxu1 %v1558_v37  ;;  %v1562_v5 = vmul.f32 %v1498_v48, %v4242_v56  ;;  %v1497_v29 = vmul.f32 %v1433_v54, %v1241_v35  ;;  %v1437_v6 = vadd.f32 1.0, %v2471_v19  ;;  %v4251_v46 = vld [vmem:[#allocation36_spill] sm:$0xff]  ;;  %v4019_v54 = vld [vmem:[%s4113_s6] ss:$0 sm:$0xff] }
 0x20b   : > { %v2477_v59 = vpop.eup %2476  ;;  %v1557_v30 = vmul.f32 %v1493_v44, %v4243_v20  ;;  %v1245_v41 = vmul.f32 0.5, %v3915_v53  ;;  %v1248_v62 = vmul.f32 0.5, %v3956_v15  ;;  %v1499_v12 = vmul.f32 %v1435_v26, %v1243_v17  ;;  %v4253_v57 = vld [vmem:[#allocation40_spill] sm:$0xff] }
 0x20c   : > { %v2479_v22 = vpop.eup %2478  ;;  %v1440_v32 = vadd.f32 1.0, %v2477_v59  ;;  %1767 = vmatmul.mubr.f32.gmra.mxu0 %v1555_v33  ;;  %v1250_v13 = vmul.f32 0.5, %v3960_v45  ;;  %v1564_v0 = vmul.f32 %v1500_v40, %v4244_v11  ;;  %v1439_v61 = vadd.f32 1.0, %v2473_v63 }
 0x20d   : > { %v1442_v24 = vadd.f32 1.0, %v2479_v22  ;;  %1912 = vmatmul.mubr.f32.gmra.mxu1 %v1557_v30  ;;  %1771 = vmatprep.mubr.f32.mxu0 %v1560_v2  ;;  %v1559_v9 = vmul.f32 %v1495_v49, %v4245_v51  ;;  %v1566_v47 = vmul.f32 %v1502_v31, %v4246_v25  ;;  %v1501_v53 = vmul.f32 %v1437_v6, %v1245_v41 }
 0x20e   : > { %v1504_v23 = vmul.f32 %v1440_v32, %v1248_v62  ;;  %1916 = vmatprep.mubr.f32.mxu1 %v1562_v5  ;;  %v1441_v50 = vadd.f32 1.0, %v2475_v8  ;;  %v1561_v28 = vmul.f32 %v1497_v29, %v4247_v4  ;;  %v1247_v60 = vmul.f32 0.5, %v3942_v21  ;;  %v4252_v21 = vld [vmem:[#allocation39_spill] sm:$0xff] }
 0x20f   : > { %v1506_v15 = vmul.f32 %v1442_v24, %v1250_v13  ;;  %v1249_v45 = vmul.f32 0.5, %v3945_v42  ;;  %v1563_v58 = vmul.f32 %v1499_v12, %v4249_v3  ;;  %v1565_v52 = vmul.f32 %v1501_v53, %v4251_v46 }
 0x210   : > { %1772 = vmatmul.mubr.f32.gmra.mxu0 %v1559_v9  ;;  %v1568_v27 = vmul.f32 %v1504_v23, %v4248_v1  ;;  %v1503_v18 = vmul.f32 %v1439_v61, %v1247_v60 }
 0x211   : > { %1917 = vmatmul.mubr.f32.gmra.mxu1 %v1561_v28  ;;  %1776 = vmatprep.mubr.f32.mxu0 %v1564_v0  ;;  %v1570_v34 = vmul.f32 %v1506_v15, %v4250_v39  ;;  %v1505_v48 = vmul.f32 %v1441_v50, %v1249_v45 }
 0x212   : > { %1921 = vmatprep.mubr.f32.mxu1 %v1566_v47  ;;  %v1567_v42 = vmul.f32 %v1503_v18, %v4252_v21 }
 0x213   : > { %v1569_v16 = vmul.f32 %v1505_v48, %v4253_v57 }
 0x214   : > { %1777 = vmatmul.mubr.f32.gmra.mxu0 %v1563_v58 }
 0x215   : > { %1922 = vmatmul.mubr.f32.gmra.mxu1 %v1565_v52  ;;  %1781 = vmatprep.mubr.f32.mxu0 %v1568_v27 }
 0x216   : > { %1926 = vmatprep.mubr.f32.mxu1 %v1570_v34 }
 0x218   : > { %1782 = vmatmul.mubr.f32.gmra.mxu0 %v1567_v42 }
 0x219   : > { %1927 = vmatmul.mubr.f32.gmra.mxu1 %v1569_v16 }
 0x281   : > { %v2130_v37 = vpop.f32.mrf.mxu0  ;;  %v2210_v44 = vpop.f32.mrf.mxu1 }
 0x283   : > { %v2131_v38 = vpop.f32.mrf.mxu0  ;;  %v2211_v10 = vpop.f32.mrf.mxu1 }
 0x284   : > { %v2132_v43 = vadd.f32 %v2131_v38, %v2130_v37  ;;  %v2212_v36 = vadd.f32 %v2211_v10, %v2210_v44 }
 0x286   : > { %v1709_v19 = vadd.f32 %v2132_v43, %v4019_v54 }
 0x288   : > { %v1854_v7 = vadd.f32 %v2212_v36, %v1709_v19  ;;  %v2133_v63 = vpop.f32.mrf.mxu0 }
 0x289   : > { %v2213_v35 = vpop.f32.mrf.mxu1 }
 0x28a   : > { %1932 = vst [vmem:[%s4024_s23] sm:$0xff] %v1854_v7  ;;  %v2134_v26 = vpop.f32.mrf.mxu0 }
 0x28b   : > { %v2135_v40 = vadd.f32 %v2134_v26, %v2133_v63  ;;  %v2214_v14 = vpop.f32.mrf.mxu1 }
 0x28c   : > { %v2215_v8 = vadd.f32 %v2214_v14, %v2213_v35 }
 0x28d   : > { %v1714_v2 = vadd.f32 %v2135_v40, %v4019_v54 }
 0x28f   : > { %v1859_v49 = vadd.f32 %v2215_v8, %v1714_v2 }
 0x290   : > { %v2136_v31 = vpop.f32.mrf.mxu0  ;;  %v2216_v55 = vpop.f32.mrf.mxu1 }
 0x291   : > { %1933 = vst [vmem:[%s4024_s23 + $0x8] sm:$0xff] %v1859_v49 }
 0x292   : > { %v2137_v33 = vpop.f32.mrf.mxu0  ;;  %v2217_v56 = vpop.f32.mrf.mxu1 }
 0x293   : > { %v2138_v5 = vadd.f32 %v2137_v33, %v2136_v31  ;;  %v2218_v29 = vadd.f32 %v2217_v56, %v2216_v55 }
 0x295   : > { %v1719_v59 = vadd.f32 %v2138_v5, %v4019_v54 }
 0x297   : > { %v1864_v17 = vadd.f32 %v2218_v29, %v1719_v59  ;;  %v2139_v6 = vpop.f32.mrf.mxu0  ;;  %v2219_v20 = vpop.f32.mrf.mxu1 }
 0x299   : > { %1934 = vst [vmem:[%s4024_s23 + $0x10] sm:$0xff] %v1864_v17  ;;  %v2140_v30 = vpop.f32.mrf.mxu0  ;;  %v2220_v22 = vpop.f32.mrf.mxu1 }
 0x29a   : > { %v2141_v41 = vadd.f32 %v2140_v30, %v2139_v6  ;;  %v2221_v32 = vadd.f32 %v2220_v22, %v2219_v20 }
 0x29c   : > { %v1724_v62 = vadd.f32 %v2141_v41, %v4019_v54 }
 0x29e   : > { %v1869_v12 = vadd.f32 %v2221_v32, %v1724_v62 }
 0x29f   : > { %v2142_v13 = vpop.f32.mrf.mxu0  ;;  %v2222_v24 = vpop.f32.mrf.mxu1 }
 0x2a0   : > { %1935 = vst [vmem:[%s4024_s23 + $0x18] sm:$0xff] %v1869_v12 }
 0x2a1   : > { %v2143_v11 = vpop.f32.mrf.mxu0  ;;  %v2223_v0 = vpop.f32.mrf.mxu1 }
 0x2a2   : > { %v2144_v61 = vadd.f32 %v2143_v11, %v2142_v13  ;;  %v2224_v51 = vadd.f32 %v2223_v0, %v2222_v24 }
 0x2a4   : > { %v1729_v23 = vadd.f32 %v2144_v61, %v4019_v54 }
 0x2a5   : > { %v2145_v9 = vpop.f32.mrf.mxu0  ;;  %v2225_v25 = vpop.f32.mrf.mxu1 }
 0x2a6   : > { %v1874_v47 = vadd.f32 %v2224_v51, %v1729_v23 }
 0x2a7   : > { %v2146_v53 = vpop.f32.mrf.mxu0  ;;  %v2226_v50 = vpop.f32.mrf.mxu1 }
 0x2a8   : > { %1936 = vst [vmem:[%s4024_s23 + $0x20] sm:$0xff] %v1874_v47  ;;  %v2147_v15 = vadd.f32 %v2146_v53, %v2145_v9  ;;  %v2227_v28 = vadd.f32 %v2226_v50, %v2225_v25 }
 0x2aa   : > { %v1734_v4 = vadd.f32 %v2147_v15, %v4019_v54 }
 0x2ac   : > { %v1879_v60 = vadd.f32 %v2227_v28, %v1734_v4  ;;  %v2148_v45 = vpop.f32.mrf.mxu0 }
 0x2ad   : > { %v2228_v1 = vpop.f32.mrf.mxu1 }
 0x2ae   : > { %1937 = vst [vmem:[%s4024_s23 + $0x28] sm:$0xff] %v1879_v60  ;;  %v2149_v27 = vpop.f32.mrf.mxu0 }
 0x2af   : > { %v2150_v18 = vadd.f32 %v2149_v27, %v2148_v45  ;;  %v2229_v3 = vpop.f32.mrf.mxu1 }
 0x2b0   : > { %v2230_v39 = vadd.f32 %v2229_v3, %v2228_v1 }
 0x2b1   : > { %v1739_v58 = vadd.f32 %v2150_v18, %v4019_v54 }
 0x2b3   : > { %v1884_v34 = vadd.f32 %v2230_v39, %v1739_v58 }
 0x2b5   : > { %1938 = vst [vmem:[%s4024_s23 + $0x30] sm:$0xff] %v1884_v34  ;;  %v2151_v48 = vpop.f32.mrf.mxu0  ;;  %v2231_v46 = vpop.f32.mrf.mxu1 }
 0x2b7   : > { %v2152_v52 = vpop.f32.mrf.mxu0  ;;  %v2232_v21 = vpop.f32.mrf.mxu1 }
 0x2b8   : > { %v2153_v42 = vadd.f32 %v2152_v52, %v2151_v48  ;;  %v2233_v16 = vadd.f32 %v2232_v21, %v2231_v46 }
 0x2ba   : > { %v1744_v57 = vadd.f32 %v2153_v42, %v4019_v54  ;;  %v2154_v37 = vpop.f32.mrf.mxu0 }
 0x2bb   : > { %v2234_v44 = vpop.f32.mrf.mxu1 }
 0x2bc   : > { %v1889_v38 = vadd.f32 %v2233_v16, %v1744_v57  ;;  %v2155_v10 = vpop.f32.mrf.mxu0 }
 0x2bd   : > { %v2156_v43 = vadd.f32 %v2155_v10, %v2154_v37  ;;  %v2235_v19 = vpop.f32.mrf.mxu1 }
 0x2be   : > { %1939 = vst [vmem:[%s4024_s23 + $0x38] sm:$0xff] %v1889_v38  ;;  %v2236_v7 = vadd.f32 %v2235_v19, %v2234_v44 }
 0x2bf   : > { %v1749_v36 = vadd.f32 %v2156_v43, %v4019_v54 }
 0x2c0   : > { %v2157_v63 = vpop.f32.mrf.mxu0 }
 0x2c1   : > { %v1894_v35 = vadd.f32 %v2236_v7, %v1749_v36  ;;  %v2237_v26 = vpop.f32.mrf.mxu1 }
 0x2c2   : > { %v2158_v40 = vpop.f32.mrf.mxu0 }
 0x2c3   : > { %1940 = vst [vmem:[%s4024_s23 + $0x40] sm:$0xff] %v1894_v35  ;;  %v2159_v14 = vadd.f32 %v2158_v40, %v2157_v63  ;;  %v2238_v2 = vpop.f32.mrf.mxu1 }
 0x2c4   : > { %v2160_v8 = vpop.f32.mrf.mxu0  ;;  %v2239_v31 = vadd.f32 %v2238_v2, %v2237_v26 }
 0x2c5   : > { %v1754_v49 = vadd.f32 %v2159_v14, %v4019_v54  ;;  %v2240_v55 = vpop.f32.mrf.mxu1 }
 0x2c6   : > { %v2161_v33 = vpop.f32.mrf.mxu0 }
 0x2c7   : > { %v1899_v56 = vadd.f32 %v2239_v31, %v1754_v49  ;;  %v2162_v5 = vadd.f32 %v2161_v33, %v2160_v8  ;;  %v2241_v59 = vpop.f32.mrf.mxu1 }
 0x2c8   : > { %v2163_v29 = vpop.f32.mrf.mxu0  ;;  %v2242_v6 = vadd.f32 %v2241_v59, %v2240_v55 }
 0x2c9   : > { %1941 = vst [vmem:[%s4024_s23 + $0x48] sm:$0xff] %v1899_v56  ;;  %v1759_v17 = vadd.f32 %v2162_v5, %v4019_v54  ;;  %v2243_v20 = vpop.f32.mrf.mxu1 }
 0x2ca   : > { %v2164_v30 = vpop.f32.mrf.mxu0 }
 0x2cb   : > { %v1904_v22 = vadd.f32 %v2242_v6, %v1759_v17  ;;  %v2165_v41 = vadd.f32 %v2164_v30, %v2163_v29  ;;  %v2244_v62 = vpop.f32.mrf.mxu1 }
 0x2cc   : > { %v2166_v32 = vpop.f32.mrf.mxu0  ;;  %v2245_v13 = vadd.f32 %v2244_v62, %v2243_v20 }
 0x2cd   : > { %1942 = vst [vmem:[%s4024_s23 + $0x50] sm:$0xff] %v1904_v22  ;;  %v1764_v12 = vadd.f32 %v2165_v41, %v4019_v54  ;;  %v2246_v24 = vpop.f32.mrf.mxu1 }
 0x2ce   : > { %v2167_v11 = vpop.f32.mrf.mxu0 }
 0x2cf   : > { %v1909_v0 = vadd.f32 %v2245_v13, %v1764_v12  ;;  %v2168_v61 = vadd.f32 %v2167_v11, %v2166_v32  ;;  %v2247_v23 = vpop.f32.mrf.mxu1 }
 0x2d0   : > { %v2169_v51 = vpop.f32.mrf.mxu0  ;;  %v2248_v25 = vadd.f32 %v2247_v23, %v2246_v24 }
 0x2d1   : > { %1943 = vst [vmem:[%s4024_s23 + $0x58] sm:$0xff] %v1909_v0  ;;  %v1769_v9 = vadd.f32 %v2168_v61, %v4019_v54  ;;  %v2249_v47 = vpop.f32.mrf.mxu1 }
 0x2d2   : > { %v2170_v53 = vpop.f32.mrf.mxu0 }
 0x2d3   : > { %v1914_v50 = vadd.f32 %v2248_v25, %v1769_v9  ;;  %v2171_v15 = vadd.f32 %v2170_v53, %v2169_v51  ;;  %v2250_v4 = vpop.f32.mrf.mxu1 }
 0x2d4   : > { %v2172_v28 = vpop.f32.mrf.mxu0  ;;  %v2251_v45 = vadd.f32 %v2250_v4, %v2249_v47 }
 0x2d5   : > { %1944 = vst [vmem:[%s4024_s23 + $0x60] sm:$0xff] %v1914_v50  ;;  %v1774_v60 = vadd.f32 %v2171_v15, %v4019_v54  ;;  %v2252_v1 = vpop.f32.mrf.mxu1 }
 0x2d6   : > { %v2173_v27 = vpop.f32.mrf.mxu0 }
 0x2d7   : > { %v1919_v18 = vadd.f32 %v2251_v45, %v1774_v60  ;;  %v2174_v3 = vadd.f32 %v2173_v27, %v2172_v28  ;;  %v2253_v58 = vpop.f32.mrf.mxu1 }
 0x2d8   : > { %v2175_v39 = vpop.f32.mrf.mxu0  ;;  %v2254_v48 = vadd.f32 %v2253_v58, %v2252_v1 }
 0x2d9   : > { %1945 = vst [vmem:[%s4024_s23 + $0x68] sm:$0xff] %v1919_v18  ;;  %v1779_v34 = vadd.f32 %v2174_v3, %v4019_v54  ;;  %v2255_v46 = vpop.f32.mrf.mxu1 }
 0x2da   : > { %v2176_v52 = vpop.f32.mrf.mxu0 }
 0x2db   : > { %v1924_v21 = vadd.f32 %v2254_v48, %v1779_v34  ;;  %v2177_v42 = vadd.f32 %v2176_v52, %v2175_v39  ;;  %v2256_v57 = vpop.f32.mrf.mxu1 }
 0x2dc   : > { %v2257_v37 = vadd.f32 %v2256_v57, %v2255_v46 }
 0x2dd   : > { %1946 = vst [vmem:[%s4024_s23 + $0x70] sm:$0xff] %v1924_v21  ;;  %v1784_v16 = vadd.f32 %v2177_v42, %v4019_v54 }
 0x2df   : > { %v1929_v44 = vadd.f32 %v2257_v37, %v1784_v16 }
 0x2e1   : > { %1947 = vst [vmem:[%s4024_s23 + $0x78] sm:$0xff] %v1929_v44 }
 0x2e2   : > { %2625 = shalt.err (!%p2622_p10)
}
 0x2e3   : > { %s2626_s30 = scalar_lea.hbm %s4061_s18, 2048  ;;  %s2630_s20 = scalar_lea.hbm %s4114_s7, 4096 }
 0x2e4   : > { %p2627_p3 = scmp.ne.s32.totalorder %s4061_s18, %s2626_s30  ;;  %p2631_p11 = scmp.lt.s32.totalorder %s4061_s18, %s4114_s7 }
 0x2e5   : > { %p2632_p4 = scmp.lt.s32.totalorder %s2630_s20, %s2626_s30 }
 0x2e6   : > { %p2628_p8 = pnand %p2627_p3, %p4254_p1 }
 0x2e7   : > { %p2633_p7 = por %p2632_p4, %p2631_p11 }
 0x2e8   : > { %p2629_p6 = pneg %p2628_p8 }
 0x2ea   : > { %p2634_p12 = pnand %p2633_p7, %p2629_p6 }
 0x2ec   : > { %2637 = shalt.err (!%p2634_p12)
}
 0x2ed   : > { %s2697_s10 = smov 128   ;;  %s2698_s13 = smov 8  }
 0x2ee   : > { %2276 = dma.vmem_to_hbm [thread:$0]  (%p4254_p1), %s4063_s19, 2048, %s4061_s18, %s1949_s14, %s2697_s10, %s2697_s10, %s2698_s13  }
 0x2ef PF: > { %s1977_s1 = sand.u32 1, %s2672_s24   ;;  %p4255_p9 = scmp.ne.s32.totalorder %s4126_s8, 0 }
 0x2f0   : > { %p4256_p13 = scmp.ge.s32.totalorder %s2684_s27, 2  ;;  %s1978_s28 = scalar_lea.sflag [#allocation4], %s1977_s1 }
 0x2f2   : > { %p2296_p2 = pnand %p4256_p13, %p4255_p9 }
 0x2f4   : > { %p2297_p0 = pneg %p2296_p2 }
 0x2f6   : > { %2667 = dma.done.wait (%p2297_p0), %s1978_s28, 2048  }
 0x2f7   : > { %2669 = vsyncadd (%p2297_p0), %s1978_s28, 4294965248  ;;  %p22_p5 = scmp.ge.s32.totalorder %s2830_s21, 4   ;;  %s4257_s24 = smov %s2676_s25 }
 0x2f8   : > { %s4258_s25 = smov %s2680_s26  ;;  %s4259_s26 = smov %s2839_s29 }
 0x2f9   : > { %s4260_s27 = smov %s2830_s21  ;;  %24 = sbr.rel (!%p22_p5) target bundleno = 9 (0x9), region = 109 }
 0x2fe   :  { %1983 = vsyncpa [#allocation3], 1 }
 0x2ff   :  { %1985 = vsyncpa [#allocation3 + $0x1], 1 }
 0x300   :  { %1986 = vsyncpa [#allocation6], 1 }
 0x301   :  { %1987 = vsyncpa [#allocation9], 1 }
 0x302   :  { %1988 = vsyncpa [#allocation4], 1 }
 0x303   :  { %1990 = vsyncpa [#allocation4 + $0x1], 1 }

</bundles_post_ra>
